<compile_context>
chip_gen: v7x
topology: tpu7x:2x2x1
jax: 0.10.0
libtpu: 0.0.40
codegen_flags: <defaults>
</compile_context>

<pallas_src>
import functools
from typing import NamedTuple

import jax
import jax.numpy as jnp
from jax.experimental import pallas as pl
from jax.experimental.pallas import tpu as pltpu


NEG_INF = -1e9
_VMEM_LIMIT = 32 * 1024 * 1024  # conservative scoped-VMEM budget; fits v7x's 64 MiB too


class T5Config(NamedTuple):
    n_heads: int = 4
    d_kv: int = 8
    num_buckets: int = 32
    max_distance: int = 128


def _rms(x, w):
    """T5 LayerNorm: RMS only (no mean subtraction, no bias)."""
    var = jnp.mean(x * x, axis=-1, keepdims=True)
    return x * jax.lax.rsqrt(var + 1e-6) * w


# ----------------------------------------------------------------------------
# Fused attention block kernel (one grid step per batch element)
#   out = h_q + O( softmax( (LN(h_q) Wq)(KVsrc Wk)^T + bias + mask ) (KVsrc Wv) )
# ----------------------------------------------------------------------------
def _attn_block_kernel(*refs, n_heads, d_kv, self_attn):
    if self_attn:
        (hq_ref, lnw_ref, wq_ref, wkv_ref, wo_ref, bias_ref, mask_ref, o_ref) = refs
    else:
        (hq_ref, hkv_ref, lnw_ref, wq_ref, wkv_ref, wo_ref, bias_ref, mask_ref,
         o_ref) = refs

    x = hq_ref[0]                                    # (Sq, D)
    n = _rms(x, lnw_ref[...])                        # pre-norm fused in-kernel
    # T5 cross-attention keys/values come from the (already normalized) encoder output.
    kv_src = n if self_attn else hkv_ref[0]

    hd = n_heads * d_kv
    q = jnp.dot(n, wq_ref[...], preferred_element_type=jnp.float32)         # (Sq, H*Dh)
    kv = jnp.dot(kv_src, wkv_ref[...], preferred_element_type=jnp.float32)  # (Sk, 2*H*Dh)
    k = kv[:, :hd]
    v = kv[:, hd:]

    mask = mask_ref[0]                               # (1, Sk) additive, broadcasts

    ctx_heads = []
    for h in range(n_heads):
        qh = q[:, h * d_kv:(h + 1) * d_kv]           # (Sq, Dh)
        kh = k[:, h * d_kv:(h + 1) * d_kv]           # (Sk, Dh)
        vh = v[:, h * d_kv:(h + 1) * d_kv]           # (Sk, Dh)
        # T5 does NOT scale by 1/sqrt(d_k). Contract the shared minor dim directly
        # (no k.T -> no XLU transpose / VMEM relayout).
        s = jax.lax.dot_general(qh, kh, (((1,), (1,)), ((), ())),
                                preferred_element_type=jnp.float32)         # (Sq, Sk)
        s = s + bias_ref[h] + mask
        m = jnp.max(s, axis=-1, keepdims=True)
        p = jnp.exp(s - m)
        p = p * pl.reciprocal(jnp.sum(p, axis=-1, keepdims=True), approx=True)
        ctx_heads.append(jnp.dot(p, vh, preferred_element_type=jnp.float32))
    ctx = jnp.concatenate(ctx_heads, axis=-1)        # (Sq, H*Dh) lane-dense

    out = jnp.dot(ctx, wo_ref[...], preferred_element_type=jnp.float32)     # (Sq, D)
    o_ref[0] = x + out                               # residual add fused


def attn_block(h_q, h_kv, lnw, wq, wkv, wo, bias, mask, *, n_heads, d_kv, self_attn):
    """h_q: (B,Sq,D). h_kv: (B,Sk,D) or None (self-attn). bias: (H,Sq,Sk) shared
    across batch. mask: (B,1,Sk) additive. Returns h_q + Attn(LN(h_q), ...)."""
    B, Sq, D = h_q.shape
    Sk = Sq if self_attn else h_kv.shape[1]
    hd = n_heads * d_kv

    in_arrays = [h_q]
    in_specs = [pl.BlockSpec((1, Sq, D), lambda b: (b, 0, 0))]
    if not self_attn:
        in_arrays.append(h_kv)
        in_specs.append(pl.BlockSpec((1, Sk, D), lambda b: (b, 0, 0)))
    in_arrays += [lnw, wq, wkv, wo, bias, mask]
    in_specs += [
        pl.BlockSpec((1, D), lambda b: (0, 0)),
        pl.BlockSpec((D, hd), lambda b: (0, 0)),
        pl.BlockSpec((D, 2 * hd), lambda b: (0, 0)),
        pl.BlockSpec((hd, D), lambda b: (0, 0)),
        pl.BlockSpec((n_heads, Sq, Sk), lambda b: (0, 0, 0)),  # shared, no Bx duplication
        pl.BlockSpec((1, 1, Sk), lambda b: (b, 0, 0)),
    ]

    return pl.pallas_call(
        functools.partial(_attn_block_kernel, n_heads=n_heads, d_kv=d_kv,
                          self_attn=self_attn),
        out_shape=jax.ShapeDtypeStruct((B, Sq, D), jnp.float32),
        grid_spec=pltpu.PrefetchScalarGridSpec(
            num_scalar_prefetch=0,
            grid=(B,),
            in_specs=in_specs,
            out_specs=pl.BlockSpec((1, Sq, D), lambda b: (b, 0, 0)),
        ),
        compiler_params=pltpu.CompilerParams(
            dimension_semantics=("parallel",),
            vmem_limit_bytes=_VMEM_LIMIT,
        ),
    )(*in_arrays)


# ----------------------------------------------------------------------------
# Fused FFN block kernel: out = LN_final( x + Wo * relu(Wi * LN(x)) )
# Tiled over rows of the flattened (B*S, D) hidden state.
# ----------------------------------------------------------------------------
def _ffn_block_kernel(h_ref, lnw_ref, wi_ref, wo_ref, lnf_ref, o_ref):
    x = h_ref[...]                                    # (tm, D)
    n = _rms(x, lnw_ref[...])
    y = jnp.maximum(jnp.dot(n, wi_ref[...], preferred_element_type=jnp.float32), 0.0)
    y = jnp.dot(y, wo_ref[...], preferred_element_type=jnp.float32)
    o_ref[...] = _rms(x + y, lnf_ref[...])


def _row_tile(m):
    for t in (512, 256, 128, 64, 32, 16, 8):
        if m % t == 0:
            return t
    return m


def ffn_block(h, lnw, wi, wo, lnf):
    """Fused LN -> ReLU-FFN -> residual -> final LN. h: (B, S, D)."""
    B, S, D = h.shape
    M = B * S
    F = wi.shape[1]
    x = h.reshape(M, D)
    tm = _row_tile(M)

    out = pl.pallas_call(
        _ffn_block_kernel,
        out_shape=jax.ShapeDtypeStruct((M, D), jnp.float32),
        grid_spec=pltpu.PrefetchScalarGridSpec(
            num_scalar_prefetch=0,
            grid=(M // tm,),
            in_specs=[
                pl.BlockSpec((tm, D), lambda i: (i, 0)),
                pl.BlockSpec((1, D), lambda i: (0, 0)),
                pl.BlockSpec((D, F), lambda i: (0, 0)),
                pl.BlockSpec((F, D), lambda i: (0, 0)),
                pl.BlockSpec((1, D), lambda i: (0, 0)),
            ],
            out_specs=pl.BlockSpec((tm, D), lambda i: (i, 0)),
        ),
        compiler_params=pltpu.CompilerParams(
            dimension_semantics=("parallel",),
            vmem_limit_bytes=_VMEM_LIMIT,
        ),
    )(x, lnw, wi, wo, lnf)
    return out.reshape(B, S, D)


# ----------------------------------------------------------------------------
# T5 glue (relative position bias) — plain JAX (int bucketing + gather)
# ----------------------------------------------------------------------------
def _relative_position_bucket(relative_position, bidirectional, num_buckets, max_distance):
    relative_buckets = jnp.zeros_like(relative_position)
    if bidirectional:
        num_buckets //= 2
        relative_buckets += (relative_position > 0).astype(jnp.int32) * num_buckets
        relative_position = jnp.abs(relative_position)
    else:
        relative_position = -jnp.minimum(relative_position, 0)
    max_exact = num_buckets // 2
    is_small = relative_position < max_exact
    rp_f = jnp.maximum(relative_position, 1).astype(jnp.float32)
    val_if_large = max_exact + (
        jnp.log(rp_f / max_exact)
        / jnp.log(max_distance / max_exact)
        * (num_buckets - max_exact)
    ).astype(jnp.int32)
    val_if_large = jnp.minimum(val_if_large, num_buckets - 1)
    relative_buckets += jnp.where(is_small, relative_position, val_if_large)
    return relative_buckets


def _position_bias(rel_table, q_len, k_len, bidirectional, num_buckets, max_distance):
    ctx = jnp.arange(q_len)[:, None]
    mem = jnp.arange(k_len)[None, :]
    rel = mem - ctx
    buckets = _relative_position_bucket(rel, bidirectional, num_buckets, max_distance)
    vals = rel_table[buckets]                  # (q, k, H)
    return jnp.transpose(vals, (2, 0, 1))      # (H, q, k)


# ----------------------------------------------------------------------------
# Synthetic 1-layer T5Model forward
# ----------------------------------------------------------------------------
def t5_model(params, cfg, input_ids, attention_mask, decoder_input_ids):
    """Returns decoder last_hidden_state (B, S_dec, D)."""
    p = params
    H, Dh = cfg.n_heads, cfg.d_kv
    B, S_enc = input_ids.shape
    S_dec = decoder_input_ids.shape[1]

    # Additive masks stay small: (B, 1, Sk), added in-kernel (never duplicated BxH times).
    enc_pad = ((1.0 - attention_mask.astype(jnp.float32)) * NEG_INF)[:, None, :]
    dec_nomask = jnp.zeros((B, 1, S_dec), jnp.float32)

    # Relative-position biases shared across batch: (H, Sq, Sk).
    enc_bias = _position_bias(p["enc_rel_bias"], S_enc, S_enc, True,
                              cfg.num_buckets, cfg.max_distance)
    causal = jnp.tril(jnp.ones((S_dec, S_dec), jnp.float32))
    dec_bias = _position_bias(p["dec_rel_bias"], S_dec, S_dec, False,
                              cfg.num_buckets, cfg.max_distance)
    dec_bias = dec_bias + (1.0 - causal)[None] * NEG_INF
    cross_bias = jnp.zeros((H, S_dec, S_enc), jnp.float32)  # T5: no cross-attn rel bias

    # ---------------- encoder (1 pre-norm layer) ----------------
    h = p["embed"][input_ids]
    h = attn_block(h, None, p["enc_ln_sa"], p["enc_sa_q"], p["enc_sa_kv"], p["enc_sa_o"],
                   enc_bias, enc_pad, n_heads=H, d_kv=Dh, self_attn=True)
    enc_out = ffn_block(h, p["enc_ln_ff"], p["enc_ff_wi"], p["enc_ff_wo"],
                        p["enc_ln_final"])

    # ---------------- decoder (1 pre-norm layer) ----------------
    d = p["embed"][decoder_input_ids]
    d = attn_block(d, None, p["dec_ln_sa"], p["dec_sa_q"], p["dec_sa_kv"], p["dec_sa_o"],
                   dec_bias, dec_nomask, n_heads=H, d_kv=Dh, self_attn=True)
    d = attn_block(d, enc_out, p["dec_ln_ca"], p["dec_ca_q"], p["dec_ca_kv"],
                   p["dec_ca_o"], cross_bias, enc_pad,
                   n_heads=H, d_kv=Dh, self_attn=False)
    dec_out = ffn_block(d, p["dec_ln_ff"], p["dec_ff_wi"], p["dec_ff_wo"],
                        p["dec_ln_final"])
    return dec_out


_t5_model_jit = jax.jit(t5_model, static_argnums=(1,))


def kosentence_t5_forward(params, config, inputs, mode):
    """Mirrors KoSentenceT5.forward: runs the T5 model per sentence and returns
    the tuple of model outputs ('poolers')."""
    keys = ("anchor", "positive", "negative") if mode == "train" else ("sentence_1",
                                                                       "sentence_2")
    return tuple(
        _t5_model_jit(params, config,
                      inputs[k]["source"], inputs[k]["attention_mask"],
                      inputs[k]["dec_ids"])
        for k in keys
    )


# TODO(synk): KoSentenceT5.encode() calls the T5 model without decoder_input_ids
# (which T5Model cannot do as written); only forward() is implemented here.


# ----------------------------------------------------------------------------
# Deterministic parameter init + demo
# ----------------------------------------------------------------------------
def init_params(key, vocab=64, d_model=32, n_heads=4, d_kv=8, d_ff=64):
    ks = jax.random.split(key, 16)
    inner = n_heads * d_kv
    s = 0.05

    def nrm(k, shape):
        return jax.random.normal(k, shape, jnp.float32) * s

    p = {
        "embed": nrm(ks[0], (vocab, d_model)),
        "enc_rel_bias": nrm(ks[1], (32, n_heads)),
        "dec_rel_bias": nrm(ks[2], (32, n_heads)),
    }
    # attention projections (no bias in T5); K and V concatenated into one matmul
    for i, pre in enumerate(("enc_sa", "dec_sa", "dec_ca")):
        kk = jax.random.split(ks[3 + i], 4)
        p[pre + "_q"] = nrm(kk[0], (d_model, inner))
        wk = nrm(kk[1], (d_model, inner))
        wv = nrm(kk[2], (d_model, inner))
        p[pre + "_kv"] = jnp.concatenate([wk, wv], axis=1)
        p[pre + "_o"] = nrm(kk[3], (inner, d_model))
    # FFNs
    for i, pre in enumerate(("enc_ff", "dec_ff")):
        kk = jax.random.split(ks[6 + i], 2)
        p[pre + "_wi"] = nrm(kk[0], (d_model, d_ff))
        p[pre + "_wo"] = nrm(kk[1], (d_ff, d_model))
    # RMSNorm weights, shape (1, D) for in-kernel broadcast
    for name in ("enc_ln_sa", "enc_ln_ff", "enc_ln_final",
                 "dec_ln_sa", "dec_ln_ca", "dec_ln_ff", "dec_ln_final"):
        p[name] = jnp.ones((1, d_model), jnp.float32)
    return p


def make_sentence(key, B, S, vocab):
    k1, k2 = jax.random.split(key)
    src = jax.random.randint(k1, (B, S), 0, vocab, dtype=jnp.int32)
    dec = jax.random.randint(k2, (B, S), 0, vocab, dtype=jnp.int32)
    mask = jnp.ones((B, S), jnp.float32).at[0, -1].set(0.0)  # exercise padding mask
    return {"source": src, "attention_mask": mask, "dec_ids": dec}


if __name__ == "__main__":
    key = jax.random.PRNGKey(0)
    B, S, vocab, d_model = 2, 8, 64, 32
    pkey, k_a, k_p, k_n = jax.random.split(key, 4)

    cfg = T5Config(n_heads=4, d_kv=8, num_buckets=32, max_distance=128)
    params = init_params(pkey, vocab=vocab, d_model=d_model,
                         n_heads=cfg.n_heads, d_kv=cfg.d_kv, d_ff=64)
    inputs = {
        "anchor": make_sentence(k_a, B, S, vocab),
        "positive": make_sentence(k_p, B, S, vocab),
        "negative": make_sentence(k_n, B, S, vocab),
    }

    anchor, positive, negative = kosentence_t5_forward(params, cfg, inputs, mode="train")
    jax.block_until_ready((anchor, positive, negative))
    assert anchor.shape == (B, S, d_model)
    assert positive.shape == (B, S, d_model)
    assert negative.shape == (B, S, d_model)
    assert jnp.all(jnp.isfinite(anchor))
    assert jnp.all(jnp.isfinite(positive))
    assert jnp.all(jnp.isfinite(negative))
    print("KERNEL_OK")
</pallas_src>

<mosaic_0001>
module attributes {stable_mosaic.version = 11 : i64} {
  func.func @_ffn_block_kernel(%arg0: i32, %arg1: memref<16x32xf32, #tpu.memory_space<vmem>>, %arg2: memref<1x32xf32, #tpu.memory_space<vmem>>, %arg3: memref<32x64xf32, #tpu.memory_space<vmem>>, %arg4: memref<64x32xf32, #tpu.memory_space<vmem>>, %arg5: memref<1x32xf32, #tpu.memory_space<vmem>>, %arg6: memref<16x32xf32, #tpu.memory_space<vmem>>) attributes {dimension_semantics = [#tpu.dimension_semantics<parallel>], iteration_bounds = array<i64: 1>, scalar_prefetch = 0 : i64, scratch_operands = 0 : i64, tpu.core_type = #tpu.core_type<tc>, window_params = [{transform_indices = @transform_0, window_bounds = array<i64: 16, 32>}, {pipeline_mode = #tpu.pipeline_mode<synchronous>, transform_indices = @transform_1, window_bounds = array<i64: 1, 32>}, {pipeline_mode = #tpu.pipeline_mode<synchronous>, transform_indices = @transform_2, window_bounds = array<i64: 32, 64>}, {pipeline_mode = #tpu.pipeline_mode<synchronous>, transform_indices = @transform_3, window_bounds = array<i64: 64, 32>}, {pipeline_mode = #tpu.pipeline_mode<synchronous>, transform_indices = @transform_4, window_bounds = array<i64: 1, 32>}, {transform_indices = @transform_5, window_bounds = array<i64: 16, 32>}]} {
    %c0 = arith.constant 0 : index
    %c0_0 = arith.constant 0 : index
    %0 = vector.load %arg1[%c0, %c0_0] : memref<16x32xf32, #tpu.memory_space<vmem>>, vector<16x32xf32>
    %c0_1 = arith.constant 0 : index
    %c0_2 = arith.constant 0 : index
    %1 = vector.load %arg2[%c0_1, %c0_2] : memref<1x32xf32, #tpu.memory_space<vmem>>, vector<1x32xf32>
    %2 = arith.mulf %0, %0 : vector<16x32xf32>
    %cst = arith.constant dense<0.000000e+00> : vector<16xf32>
    %3 = vector.multi_reduction <add>, %2, %cst [1] : vector<16x32xf32> to vector<16xf32>
    %4 = vector.shape_cast %3 : vector<16xf32> to vector<16x1xf32>
    %cst_3 = arith.constant 3.200000e+01 : f32
    %5 = vector.broadcast %cst_3 : f32 to vector<16x1xf32>
    %6 = arith.divf %4, %5 : vector<16x1xf32>
    %cst_4 = arith.constant 9.99999997E-7 : f32
    %7 = vector.broadcast %cst_4 : f32 to vector<16x1xf32>
    %8 = arith.addf %6, %7 : vector<16x1xf32>
    %9 = math.rsqrt %8 : vector<16x1xf32>
    %10 = vector.broadcast %9 : vector<16x1xf32> to vector<16x32xf32>
    %11 = arith.mulf %0, %10 : vector<16x32xf32>
    %12 = vector.broadcast %1 : vector<1x32xf32> to vector<16x32xf32>
    %13 = arith.mulf %11, %12 : vector<16x32xf32>
    %c0_5 = arith.constant 0 : index
    %c0_6 = arith.constant 0 : index
    %14 = vector.load %arg3[%c0_5, %c0_6] : memref<32x64xf32, #tpu.memory_space<vmem>>, vector<32x64xf32>
    %cst_7 = arith.constant dense<0.000000e+00> : vector<16x64xf32>
    %15 = tpu.matmul %13, %14, %cst_7 {dimension_numbers = #tpu.dot_dimension_numbers<[1], [0], [0], [1], [0, 0, 1, 1], [], []>} : vector<16x32xf32>, vector<32x64xf32>, vector<16x64xf32> -> vector<16x64xf32>
    %cst_8 = arith.constant 0.000000e+00 : f32
    %16 = vector.broadcast %cst_8 : f32 to vector<16x64xf32>
    %17 = arith.maximumf %15, %16 : vector<16x64xf32>
    %c0_9 = arith.constant 0 : index
    %c0_10 = arith.constant 0 : index
    %18 = vector.load %arg4[%c0_9, %c0_10] : memref<64x32xf32, #tpu.memory_space<vmem>>, vector<64x32xf32>
    %cst_11 = arith.constant dense<0.000000e+00> : vector<16x32xf32>
    %19 = tpu.matmul %17, %18, %cst_11 {dimension_numbers = #tpu.dot_dimension_numbers<[1], [0], [0], [1], [0, 0, 1, 1], [], []>} : vector<16x64xf32>, vector<64x32xf32>, vector<16x32xf32> -> vector<16x32xf32>
    %20 = arith.addf %0, %19 : vector<16x32xf32>
    %c0_12 = arith.constant 0 : index
    %c0_13 = arith.constant 0 : index
    %21 = vector.load %arg5[%c0_12, %c0_13] : memref<1x32xf32, #tpu.memory_space<vmem>>, vector<1x32xf32>
    %22 = arith.mulf %20, %20 : vector<16x32xf32>
    %cst_14 = arith.constant dense<0.000000e+00> : vector<16xf32>
    %23 = vector.multi_reduction <add>, %22, %cst_14 [1] : vector<16x32xf32> to vector<16xf32>
    %24 = vector.shape_cast %23 : vector<16xf32> to vector<16x1xf32>
    %cst_15 = arith.constant 3.200000e+01 : f32
    %25 = vector.broadcast %cst_15 : f32 to vector<16x1xf32>
    %26 = arith.divf %24, %25 : vector<16x1xf32>
    %cst_16 = arith.constant 9.99999997E-7 : f32
    %27 = vector.broadcast %cst_16 : f32 to vector<16x1xf32>
    %28 = arith.addf %26, %27 : vector<16x1xf32>
    %29 = math.rsqrt %28 : vector<16x1xf32>
    %30 = vector.broadcast %29 : vector<16x1xf32> to vector<16x32xf32>
    %31 = arith.mulf %20, %30 : vector<16x32xf32>
    %32 = vector.broadcast %21 : vector<1x32xf32> to vector<16x32xf32>
    %33 = arith.mulf %31, %32 : vector<16x32xf32>
    %c0_17 = arith.constant 0 : index
    %c0_18 = arith.constant 0 : index
    %34 = vector.load %arg6[%c0_17, %c0_18] : memref<16x32xf32, #tpu.memory_space<vmem>>, vector<16x32xf32>
    tpu.vector_store %arg6[%c0_17, %c0_18], %33 {strides = array<i32>} : memref<16x32xf32, #tpu.memory_space<vmem>>, vector<16x32xf32>,
    return
  }
  func.func @transform_0(%arg0: i32) -> (i32, i32) {
    %c0_i32 = arith.constant 0 : i32
    %c0_i32_0 = arith.constant 0 : i32
    return %arg0, %c0_i32 : i32, i32
  }
  func.func @transform_1(%arg0: i32) -> (i32, i32) {
    %c0_i32 = arith.constant 0 : i32
    %c0_i32_0 = arith.constant 0 : i32
    %c0_i32_1 = arith.constant 0 : i32
    return %c0_i32, %c0_i32_0 : i32, i32
  }
  func.func @transform_2(%arg0: i32) -> (i32, i32) {
    %c0_i32 = arith.constant 0 : i32
    %c0_i32_0 = arith.constant 0 : i32
    %c0_i32_1 = arith.constant 0 : i32
    return %c0_i32, %c0_i32_0 : i32, i32
  }
  func.func @transform_3(%arg0: i32) -> (i32, i32) {
    %c0_i32 = arith.constant 0 : i32
    %c0_i32_0 = arith.constant 0 : i32
    %c0_i32_1 = arith.constant 0 : i32
    return %c0_i32, %c0_i32_0 : i32, i32
  }
  func.func @transform_4(%arg0: i32) -> (i32, i32) {
    %c0_i32 = arith.constant 0 : i32
    %c0_i32_0 = arith.constant 0 : i32
    %c0_i32_1 = arith.constant 0 : i32
    return %c0_i32, %c0_i32_0 : i32, i32
  }
  func.func @transform_5(%arg0: i32) -> (i32, i32) {
    %c0_i32 = arith.constant 0 : i32
    %c0_i32_0 = arith.constant 0 : i32
    return %arg0, %c0_i32 : i32, i32
  }
}

module attributes {stable_mosaic.version = 11 : i64} {
  func.func @_attn_block_kernel(%arg0: i32, %arg1: memref<1x8x32xf32, #tpu.memory_space<vmem>>, %arg2: memref<1x32xf32, #tpu.memory_space<vmem>>, %arg3: memref<32x32xf32, #tpu.memory_space<vmem>>, %arg4: memref<32x64xf32, #tpu.memory_space<vmem>>, %arg5: memref<32x32xf32, #tpu.memory_space<vmem>>, %arg6: memref<4x8x8xf32, #tpu.memory_space<vmem>>, %arg7: memref<1x1x8xf32, #tpu.memory_space<vmem>>, %arg8: memref<1x8x32xf32, #tpu.memory_space<vmem>>) attributes {dimension_semantics = [#tpu.dimension_semantics<parallel>], iteration_bounds = array<i64: 2>, scalar_prefetch = 0 : i64, scratch_operands = 0 : i64, tpu.core_type = #tpu.core_type<tc>, window_params = [{transform_indices = @transform_0, window_bounds = array<i64: 1, 8, 32>}, {pipeline_mode = #tpu.pipeline_mode<synchronous>, transform_indices = @transform_1, window_bounds = array<i64: 1, 32>}, {pipeline_mode = #tpu.pipeline_mode<synchronous>, transform_indices = @transform_2, window_bounds = array<i64: 32, 32>}, {pipeline_mode = #tpu.pipeline_mode<synchronous>, transform_indices = @transform_3, window_bounds = array<i64: 32, 64>}, {pipeline_mode = #tpu.pipeline_mode<synchronous>, transform_indices = @transform_4, window_bounds = array<i64: 32, 32>}, {pipeline_mode = #tpu.pipeline_mode<synchronous>, transform_indices = @transform_5, window_bounds = array<i64: 4, 8, 8>}, {transform_indices = @transform_6, window_bounds = array<i64: 1, 1, 8>}, {transform_indices = @transform_7, window_bounds = array<i64: 1, 8, 32>}]} {
    %c0 = arith.constant 0 : index
    %c0_0 = arith.constant 0 : index
    %c0_1 = arith.constant 0 : index
    %0 = vector.load %arg1[%c0, %c0_0, %c0_1] : memref<1x8x32xf32, #tpu.memory_space<vmem>>, vector<1x8x32xf32>
    %1 = vector.shape_cast %0 : vector<1x8x32xf32> to vector<8x32xf32>
    %c0_2 = arith.constant 0 : index
    %c0_3 = arith.constant 0 : index
    %2 = vector.load %arg2[%c0_2, %c0_3] : memref<1x32xf32, #tpu.memory_space<vmem>>, vector<1x32xf32>
    %3 = arith.mulf %1, %1 : vector<8x32xf32>
    %cst = arith.constant dense<0.000000e+00> : vector<8xf32>
    %4 = vector.multi_reduction <add>, %3, %cst [1] : vector<8x32xf32> to vector<8xf32>
    %5 = vector.shape_cast %4 : vector<8xf32> to vector<8x1xf32>
    %cst_4 = arith.constant 3.200000e+01 : f32
    %6 = vector.broadcast %cst_4 : f32 to vector<8x1xf32>
    %7 = arith.divf %5, %6 : vector<8x1xf32>
    %cst_5 = arith.constant 9.99999997E-7 : f32
    %8 = vector.broadcast %cst_5 : f32 to vector<8x1xf32>
    %9 = arith.addf %7, %8 : vector<8x1xf32>
    %10 = math.rsqrt %9 : vector<8x1xf32>
    %11 = vector.broadcast %10 : vector<8x1xf32> to vector<8x32xf32>
    %12 = arith.mulf %1, %11 : vector<8x32xf32>
    %13 = vector.broadcast %2 : vector<1x32xf32> to vector<8x32xf32>
    %14 = arith.mulf %12, %13 : vector<8x32xf32>
    %c0_6 = arith.constant 0 : index
    %c0_7 = arith.constant 0 : index
    %15 = vector.load %arg3[%c0_6, %c0_7] : memref<32x32xf32, #tpu.memory_space<vmem>>, vector<32x32xf32>
    %cst_8 = arith.constant dense<0.000000e+00> : vector<8x32xf32>
    %16 = tpu.matmul %14, %15, %cst_8 {dimension_numbers = #tpu.dot_dimension_numbers<[1], [0], [0], [1], [0, 0, 1, 1], [], []>} : vector<8x32xf32>, vector<32x32xf32>, vector<8x32xf32> -> vector<8x32xf32>
    %c0_9 = arith.constant 0 : index
    %c0_10 = arith.constant 0 : index
    %17 = vector.load %arg4[%c0_9, %c0_10] : memref<32x64xf32, #tpu.memory_space<vmem>>, vector<32x64xf32>
    %cst_11 = arith.constant dense<0.000000e+00> : vector<8x64xf32>
    %18 = tpu.matmul %14, %17, %cst_11 {dimension_numbers = #tpu.dot_dimension_numbers<[1], [0], [0], [1], [0, 0, 1, 1], [], []>} : vector<8x32xf32>, vector<32x64xf32>, vector<8x64xf32> -> vector<8x64xf32>
    %19 = vector.extract_strided_slice %18 {offsets = [0, 0], sizes = [8, 32], strides = [1, 1]} : vector<8x64xf32> to vector<8x32xf32>
    %20 = vector.extract_strided_slice %18 {offsets = [0, 32], sizes = [8, 32], strides = [1, 1]} : vector<8x64xf32> to vector<8x32xf32>
    %c0_12 = arith.constant 0 : index
    %c0_13 = arith.constant 0 : index
    %c0_14 = arith.constant 0 : index
    %21 = vector.load %arg7[%c0_12, %c0_13, %c0_14] : memref<1x1x8xf32, #tpu.memory_space<vmem>>, vector<1x1x8xf32>
    %22 = vector.shape_cast %21 : vector<1x1x8xf32> to vector<1x8xf32>
    %23 = vector.extract_strided_slice %16 {offsets = [0, 0], sizes = [8, 8], strides = [1, 1]} : vector<8x32xf32> to vector<8x8xf32>
    %24 = vector.extract_strided_slice %19 {offsets = [0, 0], sizes = [8, 8], strides = [1, 1]} : vector<8x32xf32> to vector<8x8xf32>
    %25 = vector.extract_strided_slice %20 {offsets = [0, 0], sizes = [8, 8], strides = [1, 1]} : vector<8x32xf32> to vector<8x8xf32>
    %cst_15 = arith.constant dense<0.000000e+00> : vector<8x8xf32>
    %26 = tpu.matmul %23, %24, %cst_15 {dimension_numbers = #tpu.dot_dimension_numbers<[1], [1], [0], [0], [0, 0, 1, 0], [], []>} : vector<8x8xf32>, vector<8x8xf32>, vector<8x8xf32> -> vector<8x8xf32>
    %c0_16 = arith.constant 0 : index
    %c0_17 = arith.constant 0 : index
    %c0_18 = arith.constant 0 : index
    %27 = vector.load %arg6[%c0_16, %c0_17, %c0_18] : memref<4x8x8xf32, #tpu.memory_space<vmem>>, vector<1x8x8xf32>
    %28 = vector.shape_cast %27 : vector<1x8x8xf32> to vector<8x8xf32>
    %29 = arith.addf %26, %28 : vector<8x8xf32>
    %30 = vector.broadcast %22 : vector<1x8xf32> to vector<8x8xf32>
    %31 = arith.addf %29, %30 : vector<8x8xf32>
    %cst_19 = arith.constant dense<0xFF800000> : vector<8xf32>
    %32 = vector.multi_reduction <maximumf>, %31, %cst_19 [1] : vector<8x8xf32> to vector<8xf32>
    %33 = vector.shape_cast %32 : vector<8xf32> to vector<8x1xf32>
    %34 = vector.broadcast %33 : vector<8x1xf32> to vector<8x8xf32>
    %35 = arith.subf %31, %34 : vector<8x8xf32>
    %36 = math.exp %35 : vector<8x8xf32>
    %cst_20 = arith.constant dense<0.000000e+00> : vector<8xf32>
    %37 = vector.multi_reduction <add>, %36, %cst_20 [1] : vector<8x8xf32> to vector<8xf32>
    %38 = vector.shape_cast %37 : vector<8xf32> to vector<8x1xf32>
    %39 = tpu.reciprocal %38 {approx = true} : vector<8x1xf32> -> vector<8x1xf32>
    %40 = vector.broadcast %39 : vector<8x1xf32> to vector<8x8xf32>
    %41 = arith.mulf %36, %40 : vector<8x8xf32>
    %cst_21 = arith.constant dense<0.000000e+00> : vector<8x8xf32>
    %42 = tpu.matmul %41, %25, %cst_21 {dimension_numbers = #tpu.dot_dimension_numbers<[1], [0], [0], [1], [0, 0, 1, 1], [], []>} : vector<8x8xf32>, vector<8x8xf32>, vector<8x8xf32> -> vector<8x8xf32>
    %43 = vector.extract_strided_slice %16 {offsets = [0, 8], sizes = [8, 8], strides = [1, 1]} : vector<8x32xf32> to vector<8x8xf32>
    %44 = vector.extract_strided_slice %19 {offsets = [0, 8], sizes = [8, 8], strides = [1, 1]} : vector<8x32xf32> to vector<8x8xf32>
    %45 = vector.extract_strided_slice %20 {offsets = [0, 8], sizes = [8, 8], strides = [1, 1]} : vector<8x32xf32> to vector<8x8xf32>
    %cst_22 = arith.constant dense<0.000000e+00> : vector<8x8xf32>
    %46 = tpu.matmul %43, %44, %cst_22 {dimension_numbers = #tpu.dot_dimension_numbers<[1], [1], [0], [0], [0, 0, 1, 0], [], []>} : vector<8x8xf32>, vector<8x8xf32>, vector<8x8xf32> -> vector<8x8xf32>
    %c1 = arith.constant 1 : index
    %c0_23 = arith.constant 0 : index
    %c0_24 = arith.constant 0 : index
    %47 = vector.load %arg6[%c1, %c0_23, %c0_24] : memref<4x8x8xf32, #tpu.memory_space<vmem>>, vector<1x8x8xf32>
    %48 = vector.shape_cast %47 : vector<1x8x8xf32> to vector<8x8xf32>
    %49 = arith.addf %46, %48 : vector<8x8xf32>
    %50 = vector.broadcast %22 : vector<1x8xf32> to vector<8x8xf32>
    %51 = arith.addf %49, %50 : vector<8x8xf32>
    %cst_25 = arith.constant dense<0xFF800000> : vector<8xf32>
    %52 = vector.multi_reduction <maximumf>, %51, %cst_25 [1] : vector<8x8xf32> to vector<8xf32>
    %53 = vector.shape_cast %52 : vector<8xf32> to vector<8x1xf32>
    %54 = vector.broadcast %53 : vector<8x1xf32> to vector<8x8xf32>
    %55 = arith.subf %51, %54 : vector<8x8xf32>
    %56 = math.exp %55 : vector<8x8xf32>
    %cst_26 = arith.constant dense<0.000000e+00> : vector<8xf32>
    %57 = vector.multi_reduction <add>, %56, %cst_26 [1] : vector<8x8xf32> to vector<8xf32>
    %58 = vector.shape_cast %57 : vector<8xf32> to vector<8x1xf32>
    %59 = tpu.reciprocal %58 {approx = true} : vector<8x1xf32> -> vector<8x1xf32>
    %60 = vector.broadcast %59 : vector<8x1xf32> to vector<8x8xf32>
    %61 = arith.mulf %56, %60 : vector<8x8xf32>
    %cst_27 = arith.constant dense<0.000000e+00> : vector<8x8xf32>
    %62 = tpu.matmul %61, %45, %cst_27 {dimension_numbers = #tpu.dot_dimension_numbers<[1], [0], [0], [1], [0, 0, 1, 1], [], []>} : vector<8x8xf32>, vector<8x8xf32>, vector<8x8xf32> -> vector<8x8xf32>
    %63 = vector.extract_strided_slice %16 {offsets = [0, 16], sizes = [8, 8], strides = [1, 1]} : vector<8x32xf32> to vector<8x8xf32>
    %64 = vector.extract_strided_slice %19 {offsets = [0, 16], sizes = [8, 8], strides = [1, 1]} : vector<8x32xf32> to vector<8x8xf32>
    %65 = vector.extract_strided_slice %20 {offsets = [0, 16], sizes = [8, 8], strides = [1, 1]} : vector<8x32xf32> to vector<8x8xf32>
    %cst_28 = arith.constant dense<0.000000e+00> : vector<8x8xf32>
    %66 = tpu.matmul %63, %64, %cst_28 {dimension_numbers = #tpu.dot_dimension_numbers<[1], [1], [0], [0], [0, 0, 1, 0], [], []>} : vector<8x8xf32>, vector<8x8xf32>, vector<8x8xf32> -> vector<8x8xf32>
    %c2 = arith.constant 2 : index
    %c0_29 = arith.constant 0 : index
    %c0_30 = arith.constant 0 : index
    %67 = vector.load %arg6[%c2, %c0_29, %c0_30] : memref<4x8x8xf32, #tpu.memory_space<vmem>>, vector<1x8x8xf32>
    %68 = vector.shape_cast %67 : vector<1x8x8xf32> to vector<8x8xf32>
    %69 = arith.addf %66, %68 : vector<8x8xf32>
    %70 = vector.broadcast %22 : vector<1x8xf32> to vector<8x8xf32>
    %71 = arith.addf %69, %70 : vector<8x8xf32>
    %cst_31 = arith.constant dense<0xFF800000> : vector<8xf32>
    %72 = vector.multi_reduction <maximumf>, %71, %cst_31 [1] : vector<8x8xf32> to vector<8xf32>
    %73 = vector.shape_cast %72 : vector<8xf32> to vector<8x1xf32>
    %74 = vector.broadcast %73 : vector<8x1xf32> to vector<8x8xf32>
    %75 = arith.subf %71, %74 : vector<8x8xf32>
    %76 = math.exp %75 : vector<8x8xf32>
    %cst_32 = arith.constant dense<0.000000e+00> : vector<8xf32>
    %77 = vector.multi_reduction <add>, %76, %cst_32 [1] : vector<8x8xf32> to vector<8xf32>
    %78 = vector.shape_cast %77 : vector<8xf32> to vector<8x1xf32>
    %79 = tpu.reciprocal %78 {approx = true} : vector<8x1xf32> -> vector<8x1xf32>
    %80 = vector.broadcast %79 : vector<8x1xf32> to vector<8x8xf32>
    %81 = arith.mulf %76, %80 : vector<8x8xf32>
    %cst_33 = arith.constant dense<0.000000e+00> : vector<8x8xf32>
    %82 = tpu.matmul %81, %65, %cst_33 {dimension_numbers = #tpu.dot_dimension_numbers<[1], [0], [0], [1], [0, 0, 1, 1], [], []>} : vector<8x8xf32>, vector<8x8xf32>, vector<8x8xf32> -> vector<8x8xf32>
    %83 = vector.extract_strided_slice %16 {offsets = [0, 24], sizes = [8, 8], strides = [1, 1]} : vector<8x32xf32> to vector<8x8xf32>
    %84 = vector.extract_strided_slice %19 {offsets = [0, 24], sizes = [8, 8], strides = [1, 1]} : vector<8x32xf32> to vector<8x8xf32>
    %85 = vector.extract_strided_slice %20 {offsets = [0, 24], sizes = [8, 8], strides = [1, 1]} : vector<8x32xf32> to vector<8x8xf32>
    %cst_34 = arith.constant dense<0.000000e+00> : vector<8x8xf32>
    %86 = tpu.matmul %83, %84, %cst_34 {dimension_numbers = #tpu.dot_dimension_numbers<[1], [1], [0], [0], [0, 0, 1, 0], [], []>} : vector<8x8xf32>, vector<8x8xf32>, vector<8x8xf32> -> vector<8x8xf32>
    %c3 = arith.constant 3 : index
    %c0_35 = arith.constant 0 : index
    %c0_36 = arith.constant 0 : index
    %87 = vector.load %arg6[%c3, %c0_35, %c0_36] : memref<4x8x8xf32, #tpu.memory_space<vmem>>, vector<1x8x8xf32>
    %88 = vector.shape_cast %87 : vector<1x8x8xf32> to vector<8x8xf32>
    %89 = arith.addf %86, %88 : vector<8x8xf32>
    %90 = vector.broadcast %22 : vector<1x8xf32> to vector<8x8xf32>
    %91 = arith.addf %89, %90 : vector<8x8xf32>
    %cst_37 = arith.constant dense<0xFF800000> : vector<8xf32>
    %92 = vector.multi_reduction <maximumf>, %91, %cst_37 [1] : vector<8x8xf32> to vector<8xf32>
    %93 = vector.shape_cast %92 : vector<8xf32> to vector<8x1xf32>
    %94 = vector.broadcast %93 : vector<8x1xf32> to vector<8x8xf32>
    %95 = arith.subf %91, %94 : vector<8x8xf32>
    %96 = math.exp %95 : vector<8x8xf32>
    %cst_38 = arith.constant dense<0.000000e+00> : vector<8xf32>
    %97 = vector.multi_reduction <add>, %96, %cst_38 [1] : vector<8x8xf32> to vector<8xf32>
    %98 = vector.shape_cast %97 : vector<8xf32> to vector<8x1xf32>
    %99 = tpu.reciprocal %98 {approx = true} : vector<8x1xf32> -> vector<8x1xf32>
    %100 = vector.broadcast %99 : vector<8x1xf32> to vector<8x8xf32>
    %101 = arith.mulf %96, %100 : vector<8x8xf32>
    %cst_39 = arith.constant dense<0.000000e+00> : vector<8x8xf32>
    %102 = tpu.matmul %101, %85, %cst_39 {dimension_numbers = #tpu.dot_dimension_numbers<[1], [0], [0], [1], [0, 0, 1, 1], [], []>} : vector<8x8xf32>, vector<8x8xf32>, vector<8x8xf32> -> vector<8x8xf32>
    %103 = tpu.concatenate %42, %62, %82, %102 in 1 : vector<8x8xf32>, vector<8x8xf32>, vector<8x8xf32>, vector<8x8xf32> -> vector<8x32xf32>
    %c0_40 = arith.constant 0 : index
    %c0_41 = arith.constant 0 : index
    %104 = vector.load %arg5[%c0_40, %c0_41] : memref<32x32xf32, #tpu.memory_space<vmem>>, vector<32x32xf32>
    %cst_42 = arith.constant dense<0.000000e+00> : vector<8x32xf32>
    %105 = tpu.matmul %103, %104, %cst_42 {dimension_numbers = #tpu.dot_dimension_numbers<[1], [0], [0], [1], [0, 0, 1, 1], [], []>} : vector<8x32xf32>, vector<32x32xf32>, vector<8x32xf32> -> vector<8x32xf32>
    %106 = arith.addf %1, %105 : vector<8x32xf32>
    %c0_43 = arith.constant 0 : index
    %c0_44 = arith.constant 0 : index
    %c0_45 = arith.constant 0 : index
    %107 = vector.load %arg8[%c0_43, %c0_44, %c0_45] : memref<1x8x32xf32, #tpu.memory_space<vmem>>, vector<1x8x32xf32>
    %108 = vector.shape_cast %107 : vector<1x8x32xf32> to vector<8x32xf32>
    %109 = vector.shape_cast %106 : vector<8x32xf32> to vector<1x8x32xf32>
    tpu.vector_store %arg8[%c0_43, %c0_44, %c0_45], %109 {strides = array<i32>} : memref<1x8x32xf32, #tpu.memory_space<vmem>>, vector<1x8x32xf32>,
    return
  }
  func.func @transform_0(%arg0: i32) -> (i32, i32, i32) {
    %c0_i32 = arith.constant 0 : i32
    %c0_i32_0 = arith.constant 0 : i32
    %c0_i32_1 = arith.constant 0 : i32
    return %arg0, %c0_i32, %c0_i32_0 : i32, i32, i32
  }
  func.func @transform_1(%arg0: i32) -> (i32, i32) {
    %c0_i32 = arith.constant 0 : i32
    %c0_i32_0 = arith.constant 0 : i32
    %c0_i32_1 = arith.constant 0 : i32
    return %c0_i32, %c0_i32_0 : i32, i32
  }
  func.func @transform_2(%arg0: i32) -> (i32, i32) {
    %c0_i32 = arith.constant 0 : i32
    %c0_i32_0 = arith.constant 0 : i32
    %c0_i32_1 = arith.constant 0 : i32
    return %c0_i32, %c0_i32_0 : i32, i32
  }
  func.func @transform_3(%arg0: i32) -> (i32, i32) {
    %c0_i32 = arith.constant 0 : i32
    %c0_i32_0 = arith.constant 0 : i32
    %c0_i32_1 = arith.constant 0 : i32
    return %c0_i32, %c0_i32_0 : i32, i32
  }
  func.func @transform_4(%arg0: i32) -> (i32, i32) {
    %c0_i32 = arith.constant 0 : i32
    %c0_i32_0 = arith.constant 0 : i32
    %c0_i32_1 = arith.constant 0 : i32
    return %c0_i32, %c0_i32_0 : i32, i32
  }
  func.func @transform_5(%arg0: i32) -> (i32, i32, i32) {
    %c0_i32 = arith.constant 0 : i32
    %c0_i32_0 = arith.constant 0 : i32
    %c0_i32_1 = arith.constant 0 : i32
    %c0_i32_2 = arith.constant 0 : i32
    return %c0_i32, %c0_i32_0, %c0_i32_1 : i32, i32, i32
  }
  func.func @transform_6(%arg0: i32) -> (i32, i32, i32) {
    %c0_i32 = arith.constant 0 : i32
    %c0_i32_0 = arith.constant 0 : i32
    %c0_i32_1 = arith.constant 0 : i32
    return %arg0, %c0_i32, %c0_i32_0 : i32, i32, i32
  }
  func.func @transform_7(%arg0: i32) -> (i32, i32, i32) {
    %c0_i32 = arith.constant 0 : i32
    %c0_i32_0 = arith.constant 0 : i32
    %c0_i32_1 = arith.constant 0 : i32
    return %arg0, %c0_i32, %c0_i32_0 : i32, i32, i32
  }
}

module attributes {stable_mosaic.version = 11 : i64} {
  func.func @_attn_block_kernel(%arg0: i32, %arg1: memref<1x8x32xf32, #tpu.memory_space<vmem>>, %arg2: memref<1x8x32xf32, #tpu.memory_space<vmem>>, %arg3: memref<1x32xf32, #tpu.memory_space<vmem>>, %arg4: memref<32x32xf32, #tpu.memory_space<vmem>>, %arg5: memref<32x64xf32, #tpu.memory_space<vmem>>, %arg6: memref<32x32xf32, #tpu.memory_space<vmem>>, %arg7: memref<4x8x8xf32, #tpu.memory_space<vmem>>, %arg8: memref<1x1x8xf32, #tpu.memory_space<vmem>>, %arg9: memref<1x8x32xf32, #tpu.memory_space<vmem>>) attributes {dimension_semantics = [#tpu.dimension_semantics<parallel>], iteration_bounds = array<i64: 2>, scalar_prefetch = 0 : i64, scratch_operands = 0 : i64, tpu.core_type = #tpu.core_type<tc>, window_params = [{transform_indices = @transform_0, window_bounds = array<i64: 1, 8, 32>}, {transform_indices = @transform_1, window_bounds = array<i64: 1, 8, 32>}, {pipeline_mode = #tpu.pipeline_mode<synchronous>, transform_indices = @transform_2, window_bounds = array<i64: 1, 32>}, {pipeline_mode = #tpu.pipeline_mode<synchronous>, transform_indices = @transform_3, window_bounds = array<i64: 32, 32>}, {pipeline_mode = #tpu.pipeline_mode<synchronous>, transform_indices = @transform_4, window_bounds = array<i64: 32, 64>}, {pipeline_mode = #tpu.pipeline_mode<synchronous>, transform_indices = @transform_5, window_bounds = array<i64: 32, 32>}, {pipeline_mode = #tpu.pipeline_mode<synchronous>, transform_indices = @transform_6, window_bounds = array<i64: 4, 8, 8>}, {transform_indices = @transform_7, window_bounds = array<i64: 1, 1, 8>}, {transform_indices = @transform_8, window_bounds = array<i64: 1, 8, 32>}]} {
    %c0 = arith.constant 0 : index
    %c0_0 = arith.constant 0 : index
    %c0_1 = arith.constant 0 : index
    %0 = vector.load %arg1[%c0, %c0_0, %c0_1] : memref<1x8x32xf32, #tpu.memory_space<vmem>>, vector<1x8x32xf32>
    %1 = vector.shape_cast %0 : vector<1x8x32xf32> to vector<8x32xf32>
    %c0_2 = arith.constant 0 : index
    %c0_3 = arith.constant 0 : index
    %2 = vector.load %arg3[%c0_2, %c0_3] : memref<1x32xf32, #tpu.memory_space<vmem>>, vector<1x32xf32>
    %3 = arith.mulf %1, %1 : vector<8x32xf32>
    %cst = arith.constant dense<0.000000e+00> : vector<8xf32>
    %4 = vector.multi_reduction <add>, %3, %cst [1] : vector<8x32xf32> to vector<8xf32>
    %5 = vector.shape_cast %4 : vector<8xf32> to vector<8x1xf32>
    %cst_4 = arith.constant 3.200000e+01 : f32
    %6 = vector.broadcast %cst_4 : f32 to vector<8x1xf32>
    %7 = arith.divf %5, %6 : vector<8x1xf32>
    %cst_5 = arith.constant 9.99999997E-7 : f32
    %8 = vector.broadcast %cst_5 : f32 to vector<8x1xf32>
    %9 = arith.addf %7, %8 : vector<8x1xf32>
    %10 = math.rsqrt %9 : vector<8x1xf32>
    %11 = vector.broadcast %10 : vector<8x1xf32> to vector<8x32xf32>
    %12 = arith.mulf %1, %11 : vector<8x32xf32>
    %13 = vector.broadcast %2 : vector<1x32xf32> to vector<8x32xf32>
    %14 = arith.mulf %12, %13 : vector<8x32xf32>
    %c0_6 = arith.constant 0 : index
    %c0_7 = arith.constant 0 : index
    %c0_8 = arith.constant 0 : index
    %15 = vector.load %arg2[%c0_6, %c0_7, %c0_8] : memref<1x8x32xf32, #tpu.memory_space<vmem>>, vector<1x8x32xf32>
    %16 = vector.shape_cast %15 : vector<1x8x32xf32> to vector<8x32xf32>
    %c0_9 = arith.constant 0 : index
    %c0_10 = arith.constant 0 : index
    %17 = vector.load %arg4[%c0_9, %c0_10] : memref<32x32xf32, #tpu.memory_space<vmem>>, vector<32x32xf32>
    %cst_11 = arith.constant dense<0.000000e+00> : vector<8x32xf32>
    %18 = tpu.matmul %14, %17, %cst_11 {dimension_numbers = #tpu.dot_dimension_numbers<[1], [0], [0], [1], [0, 0, 1, 1], [], []>} : vector<8x32xf32>, vector<32x32xf32>, vector<8x32xf32> -> vector<8x32xf32>
    %c0_12 = arith.constant 0 : index
    %c0_13 = arith.constant 0 : index
    %19 = vector.load %arg5[%c0_12, %c0_13] : memref<32x64xf32, #tpu.memory_space<vmem>>, vector<32x64xf32>
    %cst_14 = arith.constant dense<0.000000e+00> : vector<8x64xf32>
    %20 = tpu.matmul %16, %19, %cst_14 {dimension_numbers = #tpu.dot_dimension_numbers<[1], [0], [0], [1], [0, 0, 1, 1], [], []>} : vector<8x32xf32>, vector<32x64xf32>, vector<8x64xf32> -> vector<8x64xf32>
    %21 = vector.extract_strided_slice %20 {offsets = [0, 0], sizes = [8, 32], strides = [1, 1]} : vector<8x64xf32> to vector<8x32xf32>
    %22 = vector.extract_strided_slice %20 {offsets = [0, 32], sizes = [8, 32], strides = [1, 1]} : vector<8x64xf32> to vector<8x32xf32>
    %c0_15 = arith.constant 0 : index
    %c0_16 = arith.constant 0 : index
    %c0_17 = arith.constant 0 : index
    %23 = vector.load %arg8[%c0_15, %c0_16, %c0_17] : memref<1x1x8xf32, #tpu.memory_space<vmem>>, vector<1x1x8xf32>
    %24 = vector.shape_cast %23 : vector<1x1x8xf32> to vector<1x8xf32>
    %25 = vector.extract_strided_slice %18 {offsets = [0, 0], sizes = [8, 8], strides = [1, 1]} : vector<8x32xf32> to vector<8x8xf32>
    %26 = vector.extract_strided_slice %21 {offsets = [0, 0], sizes = [8, 8], strides = [1, 1]} : vector<8x32xf32> to vector<8x8xf32>
    %27 = vector.extract_strided_slice %22 {offsets = [0, 0], sizes = [8, 8], strides = [1, 1]} : vector<8x32xf32> to vector<8x8xf32>
    %cst_18 = arith.constant dense<0.000000e+00> : vector<8x8xf32>
    %28 = tpu.matmul %25, %26, %cst_18 {dimension_numbers = #tpu.dot_dimension_numbers<[1], [1], [0], [0], [0, 0, 1, 0], [], []>} : vector<8x8xf32>, vector<8x8xf32>, vector<8x8xf32> -> vector<8x8xf32>
    %c0_19 = arith.constant 0 : index
    %c0_20 = arith.constant 0 : index
    %c0_21 = arith.constant 0 : index
    %29 = vector.load %arg7[%c0_19, %c0_20, %c0_21] : memref<4x8x8xf32, #tpu.memory_space<vmem>>, vector<1x8x8xf32>
    %30 = vector.shape_cast %29 : vector<1x8x8xf32> to vector<8x8xf32>
    %31 = arith.addf %28, %30 : vector<8x8xf32>
    %32 = vector.broadcast %24 : vector<1x8xf32> to vector<8x8xf32>
    %33 = arith.addf %31, %32 : vector<8x8xf32>
    %cst_22 = arith.constant dense<0xFF800000> : vector<8xf32>
    %34 = vector.multi_reduction <maximumf>, %33, %cst_22 [1] : vector<8x8xf32> to vector<8xf32>
    %35 = vector.shape_cast %34 : vector<8xf32> to vector<8x1xf32>
    %36 = vector.broadcast %35 : vector<8x1xf32> to vector<8x8xf32>
    %37 = arith.subf %33, %36 : vector<8x8xf32>
    %38 = math.exp %37 : vector<8x8xf32>
    %cst_23 = arith.constant dense<0.000000e+00> : vector<8xf32>
    %39 = vector.multi_reduction <add>, %38, %cst_23 [1] : vector<8x8xf32> to vector<8xf32>
    %40 = vector.shape_cast %39 : vector<8xf32> to vector<8x1xf32>
    %41 = tpu.reciprocal %40 {approx = true} : vector<8x1xf32> -> vector<8x1xf32>
    %42 = vector.broadcast %41 : vector<8x1xf32> to vector<8x8xf32>
    %43 = arith.mulf %38, %42 : vector<8x8xf32>
    %cst_24 = arith.constant dense<0.000000e+00> : vector<8x8xf32>
    %44 = tpu.matmul %43, %27, %cst_24 {dimension_numbers = #tpu.dot_dimension_numbers<[1], [0], [0], [1], [0, 0, 1, 1], [], []>} : vector<8x8xf32>, vector<8x8xf32>, vector<8x8xf32> -> vector<8x8xf32>
    %45 = vector.extract_strided_slice %18 {offsets = [0, 8], sizes = [8, 8], strides = [1, 1]} : vector<8x32xf32> to vector<8x8xf32>
    %46 = vector.extract_strided_slice %21 {offsets = [0, 8], sizes = [8, 8], strides = [1, 1]} : vector<8x32xf32> to vector<8x8xf32>
    %47 = vector.extract_strided_slice %22 {offsets = [0, 8], sizes = [8, 8], strides = [1, 1]} : vector<8x32xf32> to vector<8x8xf32>
    %cst_25 = arith.constant dense<0.000000e+00> : vector<8x8xf32>
    %48 = tpu.matmul %45, %46, %cst_25 {dimension_numbers = #tpu.dot_dimension_numbers<[1], [1], [0], [0], [0, 0, 1, 0], [], []>} : vector<8x8xf32>, vector<8x8xf32>, vector<8x8xf32> -> vector<8x8xf32>
    %c1 = arith.constant 1 : index
    %c0_26 = arith.constant 0 : index
    %c0_27 = arith.constant 0 : index
    %49 = vector.load %arg7[%c1, %c0_26, %c0_27] : memref<4x8x8xf32, #tpu.memory_space<vmem>>, vector<1x8x8xf32>
    %50 = vector.shape_cast %49 : vector<1x8x8xf32> to vector<8x8xf32>
    %51 = arith.addf %48, %50 : vector<8x8xf32>
    %52 = vector.broadcast %24 : vector<1x8xf32> to vector<8x8xf32>
    %53 = arith.addf %51, %52 : vector<8x8xf32>
    %cst_28 = arith.constant dense<0xFF800000> : vector<8xf32>
    %54 = vector.multi_reduction <maximumf>, %53, %cst_28 [1] : vector<8x8xf32> to vector<8xf32>
    %55 = vector.shape_cast %54 : vector<8xf32> to vector<8x1xf32>
    %56 = vector.broadcast %55 : vector<8x1xf32> to vector<8x8xf32>
    %57 = arith.subf %53, %56 : vector<8x8xf32>
    %58 = math.exp %57 : vector<8x8xf32>
    %cst_29 = arith.constant dense<0.000000e+00> : vector<8xf32>
    %59 = vector.multi_reduction <add>, %58, %cst_29 [1] : vector<8x8xf32> to vector<8xf32>
    %60 = vector.shape_cast %59 : vector<8xf32> to vector<8x1xf32>
    %61 = tpu.reciprocal %60 {approx = true} : vector<8x1xf32> -> vector<8x1xf32>
    %62 = vector.broadcast %61 : vector<8x1xf32> to vector<8x8xf32>
    %63 = arith.mulf %58, %62 : vector<8x8xf32>
    %cst_30 = arith.constant dense<0.000000e+00> : vector<8x8xf32>
    %64 = tpu.matmul %63, %47, %cst_30 {dimension_numbers = #tpu.dot_dimension_numbers<[1], [0], [0], [1], [0, 0, 1, 1], [], []>} : vector<8x8xf32>, vector<8x8xf32>, vector<8x8xf32> -> vector<8x8xf32>
    %65 = vector.extract_strided_slice %18 {offsets = [0, 16], sizes = [8, 8], strides = [1, 1]} : vector<8x32xf32> to vector<8x8xf32>
    %66 = vector.extract_strided_slice %21 {offsets = [0, 16], sizes = [8, 8], strides = [1, 1]} : vector<8x32xf32> to vector<8x8xf32>
    %67 = vector.extract_strided_slice %22 {offsets = [0, 16], sizes = [8, 8], strides = [1, 1]} : vector<8x32xf32> to vector<8x8xf32>
    %cst_31 = arith.constant dense<0.000000e+00> : vector<8x8xf32>
    %68 = tpu.matmul %65, %66, %cst_31 {dimension_numbers = #tpu.dot_dimension_numbers<[1], [1], [0], [0], [0, 0, 1, 0], [], []>} : vector<8x8xf32>, vector<8x8xf32>, vector<8x8xf32> -> vector<8x8xf32>
    %c2 = arith.constant 2 : index
    %c0_32 = arith.constant 0 : index
    %c0_33 = arith.constant 0 : index
    %69 = vector.load %arg7[%c2, %c0_32, %c0_33] : memref<4x8x8xf32, #tpu.memory_space<vmem>>, vector<1x8x8xf32>
    %70 = vector.shape_cast %69 : vector<1x8x8xf32> to vector<8x8xf32>
    %71 = arith.addf %68, %70 : vector<8x8xf32>
    %72 = vector.broadcast %24 : vector<1x8xf32> to vector<8x8xf32>
    %73 = arith.addf %71, %72 : vector<8x8xf32>
    %cst_34 = arith.constant dense<0xFF800000> : vector<8xf32>
    %74 = vector.multi_reduction <maximumf>, %73, %cst_34 [1] : vector<8x8xf32> to vector<8xf32>
    %75 = vector.shape_cast %74 : vector<8xf32> to vector<8x1xf32>
    %76 = vector.broadcast %75 : vector<8x1xf32> to vector<8x8xf32>
    %77 = arith.subf %73, %76 : vector<8x8xf32>
    %78 = math.exp %77 : vector<8x8xf32>
    %cst_35 = arith.constant dense<0.000000e+00> : vector<8xf32>
    %79 = vector.multi_reduction <add>, %78, %cst_35 [1] : vector<8x8xf32> to vector<8xf32>
    %80 = vector.shape_cast %79 : vector<8xf32> to vector<8x1xf32>
    %81 = tpu.reciprocal %80 {approx = true} : vector<8x1xf32> -> vector<8x1xf32>
    %82 = vector.broadcast %81 : vector<8x1xf32> to vector<8x8xf32>
    %83 = arith.mulf %78, %82 : vector<8x8xf32>
    %cst_36 = arith.constant dense<0.000000e+00> : vector<8x8xf32>
    %84 = tpu.matmul %83, %67, %cst_36 {dimension_numbers = #tpu.dot_dimension_numbers<[1], [0], [0], [1], [0, 0, 1, 1], [], []>} : vector<8x8xf32>, vector<8x8xf32>, vector<8x8xf32> -> vector<8x8xf32>
    %85 = vector.extract_strided_slice %18 {offsets = [0, 24], sizes = [8, 8], strides = [1, 1]} : vector<8x32xf32> to vector<8x8xf32>
    %86 = vector.extract_strided_slice %21 {offsets = [0, 24], sizes = [8, 8], strides = [1, 1]} : vector<8x32xf32> to vector<8x8xf32>
    %87 = vector.extract_strided_slice %22 {offsets = [0, 24], sizes = [8, 8], strides = [1, 1]} : vector<8x32xf32> to vector<8x8xf32>
    %cst_37 = arith.constant dense<0.000000e+00> : vector<8x8xf32>
    %88 = tpu.matmul %85, %86, %cst_37 {dimension_numbers = #tpu.dot_dimension_numbers<[1], [1], [0], [0], [0, 0, 1, 0], [], []>} : vector<8x8xf32>, vector<8x8xf32>, vector<8x8xf32> -> vector<8x8xf32>
    %c3 = arith.constant 3 : index
    %c0_38 = arith.constant 0 : index
    %c0_39 = arith.constant 0 : index
    %89 = vector.load %arg7[%c3, %c0_38, %c0_39] : memref<4x8x8xf32, #tpu.memory_space<vmem>>, vector<1x8x8xf32>
    %90 = vector.shape_cast %89 : vector<1x8x8xf32> to vector<8x8xf32>
    %91 = arith.addf %88, %90 : vector<8x8xf32>
    %92 = vector.broadcast %24 : vector<1x8xf32> to vector<8x8xf32>
    %93 = arith.addf %91, %92 : vector<8x8xf32>
    %cst_40 = arith.constant dense<0xFF800000> : vector<8xf32>
    %94 = vector.multi_reduction <maximumf>, %93, %cst_40 [1] : vector<8x8xf32> to vector<8xf32>
    %95 = vector.shape_cast %94 : vector<8xf32> to vector<8x1xf32>
    %96 = vector.broadcast %95 : vector<8x1xf32> to vector<8x8xf32>
    %97 = arith.subf %93, %96 : vector<8x8xf32>
    %98 = math.exp %97 : vector<8x8xf32>
    %cst_41 = arith.constant dense<0.000000e+00> : vector<8xf32>
    %99 = vector.multi_reduction <add>, %98, %cst_41 [1] : vector<8x8xf32> to vector<8xf32>
    %100 = vector.shape_cast %99 : vector<8xf32> to vector<8x1xf32>
    %101 = tpu.reciprocal %100 {approx = true} : vector<8x1xf32> -> vector<8x1xf32>
    %102 = vector.broadcast %101 : vector<8x1xf32> to vector<8x8xf32>
    %103 = arith.mulf %98, %102 : vector<8x8xf32>
    %cst_42 = arith.constant dense<0.000000e+00> : vector<8x8xf32>
    %104 = tpu.matmul %103, %87, %cst_42 {dimension_numbers = #tpu.dot_dimension_numbers<[1], [0], [0], [1], [0, 0, 1, 1], [], []>} : vector<8x8xf32>, vector<8x8xf32>, vector<8x8xf32> -> vector<8x8xf32>
    %105 = tpu.concatenate %44, %64, %84, %104 in 1 : vector<8x8xf32>, vector<8x8xf32>, vector<8x8xf32>, vector<8x8xf32> -> vector<8x32xf32>
    %c0_43 = arith.constant 0 : index
    %c0_44 = arith.constant 0 : index
    %106 = vector.load %arg6[%c0_43, %c0_44] : memref<32x32xf32, #tpu.memory_space<vmem>>, vector<32x32xf32>
    %cst_45 = arith.constant dense<0.000000e+00> : vector<8x32xf32>
    %107 = tpu.matmul %105, %106, %cst_45 {dimension_numbers = #tpu.dot_dimension_numbers<[1], [0], [0], [1], [0, 0, 1, 1], [], []>} : vector<8x32xf32>, vector<32x32xf32>, vector<8x32xf32> -> vector<8x32xf32>
    %108 = arith.addf %1, %107 : vector<8x32xf32>
    %c0_46 = arith.constant 0 : index
    %c0_47 = arith.constant 0 : index
    %c0_48 = arith.constant 0 : index
    %109 = vector.load %arg9[%c0_46, %c0_47, %c0_48] : memref<1x8x32xf32, #tpu.memory_space<vmem>>, vector<1x8x32xf32>
    %110 = vector.shape_cast %109 : vector<1x8x32xf32> to vector<8x32xf32>
    %111 = vector.shape_cast %108 : vector<8x32xf32> to vector<1x8x32xf32>
    tpu.vector_store %arg9[%c0_46, %c0_47, %c0_48], %111 {strides = array<i32>} : memref<1x8x32xf32, #tpu.memory_space<vmem>>, vector<1x8x32xf32>,
    return
  }
  func.func @transform_0(%arg0: i32) -> (i32, i32, i32) {
    %c0_i32 = arith.constant 0 : i32
    %c0_i32_0 = arith.constant 0 : i32
    %c0_i32_1 = arith.constant 0 : i32
    return %arg0, %c0_i32, %c0_i32_0 : i32, i32, i32
  }
  func.func @transform_1(%arg0: i32) -> (i32, i32, i32) {
    %c0_i32 = arith.constant 0 : i32
    %c0_i32_0 = arith.constant 0 : i32
    %c0_i32_1 = arith.constant 0 : i32
    return %arg0, %c0_i32, %c0_i32_0 : i32, i32, i32
  }
  func.func @transform_2(%arg0: i32) -> (i32, i32) {
    %c0_i32 = arith.constant 0 : i32
    %c0_i32_0 = arith.constant 0 : i32
    %c0_i32_1 = arith.constant 0 : i32
    return %c0_i32, %c0_i32_0 : i32, i32
  }
  func.func @transform_3(%arg0: i32) -> (i32, i32) {
    %c0_i32 = arith.constant 0 : i32
    %c0_i32_0 = arith.constant 0 : i32
    %c0_i32_1 = arith.constant 0 : i32
    return %c0_i32, %c0_i32_0 : i32, i32
  }
  func.func @transform_4(%arg0: i32) -> (i32, i32) {
    %c0_i32 = arith.constant 0 : i32
    %c0_i32_0 = arith.constant 0 : i32
    %c0_i32_1 = arith.constant 0 : i32
    return %c0_i32, %c0_i32_0 : i32, i32
  }
  func.func @transform_5(%arg0: i32) -> (i32, i32) {
    %c0_i32 = arith.constant 0 : i32
    %c0_i32_0 = arith.constant 0 : i32
    %c0_i32_1 = arith.constant 0 : i32
    return %c0_i32, %c0_i32_0 : i32, i32
  }
  func.func @transform_6(%arg0: i32) -> (i32, i32, i32) {
    %c0_i32 = arith.constant 0 : i32
    %c0_i32_0 = arith.constant 0 : i32
    %c0_i32_1 = arith.constant 0 : i32
    %c0_i32_2 = arith.constant 0 : i32
    return %c0_i32, %c0_i32_0, %c0_i32_1 : i32, i32, i32
  }
  func.func @transform_7(%arg0: i32) -> (i32, i32, i32) {
    %c0_i32 = arith.constant 0 : i32
    %c0_i32_0 = arith.constant 0 : i32
    %c0_i32_1 = arith.constant 0 : i32
    return %arg0, %c0_i32, %c0_i32_0 : i32, i32, i32
  }
  func.func @transform_8(%arg0: i32) -> (i32, i32, i32) {
    %c0_i32 = arith.constant 0 : i32
    %c0_i32_0 = arith.constant 0 : i32
    %c0_i32_1 = arith.constant 0 : i32
    return %arg0, %c0_i32, %c0_i32_0 : i32, i32, i32
  }
}

module attributes {stable_mosaic.version = 11 : i64} {
  func.func @_ffn_block_kernel(%arg0: i32, %arg1: memref<16x32xf32, #tpu.memory_space<vmem>>, %arg2: memref<1x32xf32, #tpu.memory_space<vmem>>, %arg3: memref<32x64xf32, #tpu.memory_space<vmem>>, %arg4: memref<64x32xf32, #tpu.memory_space<vmem>>, %arg5: memref<1x32xf32, #tpu.memory_space<vmem>>, %arg6: memref<16x32xf32, #tpu.memory_space<vmem>>) attributes {dimension_semantics = [#tpu.dimension_semantics<parallel>], iteration_bounds = array<i64: 1>, scalar_prefetch = 0 : i64, scratch_operands = 0 : i64, tpu.core_type = #tpu.core_type<tc>, window_params = [{transform_indices = @transform_0, window_bounds = array<i64: 16, 32>}, {pipeline_mode = #tpu.pipeline_mode<synchronous>, transform_indices = @transform_1, window_bounds = array<i64: 1, 32>}, {pipeline_mode = #tpu.pipeline_mode<synchronous>, transform_indices = @transform_2, window_bounds = array<i64: 32, 64>}, {pipeline_mode = #tpu.pipeline_mode<synchronous>, transform_indices = @transform_3, window_bounds = array<i64: 64, 32>}, {pipeline_mode = #tpu.pipeline_mode<synchronous>, transform_indices = @transform_4, window_bounds = array<i64: 1, 32>}, {transform_indices = @transform_5, window_bounds = array<i64: 16, 32>}]} {
    %c0 = arith.constant 0 : index
    %c0_0 = arith.constant 0 : index
    %0 = vector.load %arg1[%c0, %c0_0] : memref<16x32xf32, #tpu.memory_space<vmem>>, vector<16x32xf32>
    %c0_1 = arith.constant 0 : index
    %c0_2 = arith.constant 0 : index
    %1 = vector.load %arg2[%c0_1, %c0_2] : memref<1x32xf32, #tpu.memory_space<vmem>>, vector<1x32xf32>
    %2 = arith.mulf %0, %0 : vector<16x32xf32>
    %cst = arith.constant dense<0.000000e+00> : vector<16xf32>
    %3 = vector.multi_reduction <add>, %2, %cst [1] : vector<16x32xf32> to vector<16xf32>
    %4 = vector.shape_cast %3 : vector<16xf32> to vector<16x1xf32>
    %cst_3 = arith.constant 3.200000e+01 : f32
    %5 = vector.broadcast %cst_3 : f32 to vector<16x1xf32>
    %6 = arith.divf %4, %5 : vector<16x1xf32>
    %cst_4 = arith.constant 9.99999997E-7 : f32
    %7 = vector.broadcast %cst_4 : f32 to vector<16x1xf32>
    %8 = arith.addf %6, %7 : vector<16x1xf32>
    %9 = math.rsqrt %8 : vector<16x1xf32>
    %10 = vector.broadcast %9 : vector<16x1xf32> to vector<16x32xf32>
    %11 = arith.mulf %0, %10 : vector<16x32xf32>
    %12 = vector.broadcast %1 : vector<1x32xf32> to vector<16x32xf32>
    %13 = arith.mulf %11, %12 : vector<16x32xf32>
    %c0_5 = arith.constant 0 : index
    %c0_6 = arith.constant 0 : index
    %14 = vector.load %arg3[%c0_5, %c0_6] : memref<32x64xf32, #tpu.memory_space<vmem>>, vector<32x64xf32>
    %cst_7 = arith.constant dense<0.000000e+00> : vector<16x64xf32>
    %15 = tpu.matmul %13, %14, %cst_7 {dimension_numbers = #tpu.dot_dimension_numbers<[1], [0], [0], [1], [0, 0, 1, 1], [], []>} : vector<16x32xf32>, vector<32x64xf32>, vector<16x64xf32> -> vector<16x64xf32>
    %cst_8 = arith.constant 0.000000e+00 : f32
    %16 = vector.broadcast %cst_8 : f32 to vector<16x64xf32>
    %17 = arith.maximumf %15, %16 : vector<16x64xf32>
    %c0_9 = arith.constant 0 : index
    %c0_10 = arith.constant 0 : index
    %18 = vector.load %arg4[%c0_9, %c0_10] : memref<64x32xf32, #tpu.memory_space<vmem>>, vector<64x32xf32>
    %cst_11 = arith.constant dense<0.000000e+00> : vector<16x32xf32>
    %19 = tpu.matmul %17, %18, %cst_11 {dimension_numbers = #tpu.dot_dimension_numbers<[1], [0], [0], [1], [0, 0, 1, 1], [], []>} : vector<16x64xf32>, vector<64x32xf32>, vector<16x32xf32> -> vector<16x32xf32>
    %20 = arith.addf %0, %19 : vector<16x32xf32>
    %c0_12 = arith.constant 0 : index
    %c0_13 = arith.constant 0 : index
    %21 = vector.load %arg5[%c0_12, %c0_13] : memref<1x32xf32, #tpu.memory_space<vmem>>, vector<1x32xf32>
    %22 = arith.mulf %20, %20 : vector<16x32xf32>
    %cst_14 = arith.constant dense<0.000000e+00> : vector<16xf32>
    %23 = vector.multi_reduction <add>, %22, %cst_14 [1] : vector<16x32xf32> to vector<16xf32>
    %24 = vector.shape_cast %23 : vector<16xf32> to vector<16x1xf32>
    %cst_15 = arith.constant 3.200000e+01 : f32
    %25 = vector.broadcast %cst_15 : f32 to vector<16x1xf32>
    %26 = arith.divf %24, %25 : vector<16x1xf32>
    %cst_16 = arith.constant 9.99999997E-7 : f32
    %27 = vector.broadcast %cst_16 : f32 to vector<16x1xf32>
    %28 = arith.addf %26, %27 : vector<16x1xf32>
    %29 = math.rsqrt %28 : vector<16x1xf32>
    %30 = vector.broadcast %29 : vector<16x1xf32> to vector<16x32xf32>
    %31 = arith.mulf %20, %30 : vector<16x32xf32>
    %32 = vector.broadcast %21 : vector<1x32xf32> to vector<16x32xf32>
    %33 = arith.mulf %31, %32 : vector<16x32xf32>
    %c0_17 = arith.constant 0 : index
    %c0_18 = arith.constant 0 : index
    %34 = vector.load %arg6[%c0_17, %c0_18] : memref<16x32xf32, #tpu.memory_space<vmem>>, vector<16x32xf32>
    tpu.vector_store %arg6[%c0_17, %c0_18], %33 {strides = array<i32>} : memref<16x32xf32, #tpu.memory_space<vmem>>, vector<16x32xf32>,
    return
  }
  func.func @transform_0(%arg0: i32) -> (i32, i32) {
    %c0_i32 = arith.constant 0 : i32
    %c0_i32_0 = arith.constant 0 : i32
    return %arg0, %c0_i32 : i32, i32
  }
  func.func @transform_1(%arg0: i32) -> (i32, i32) {
    %c0_i32 = arith.constant 0 : i32
    %c0_i32_0 = arith.constant 0 : i32
    %c0_i32_1 = arith.constant 0 : i32
    return %c0_i32, %c0_i32_0 : i32, i32
  }
  func.func @transform_2(%arg0: i32) -> (i32, i32) {
    %c0_i32 = arith.constant 0 : i32
    %c0_i32_0 = arith.constant 0 : i32
    %c0_i32_1 = arith.constant 0 : i32
    return %c0_i32, %c0_i32_0 : i32, i32
  }
  func.func @transform_3(%arg0: i32) -> (i32, i32) {
    %c0_i32 = arith.constant 0 : i32
    %c0_i32_0 = arith.constant 0 : i32
    %c0_i32_1 = arith.constant 0 : i32
    return %c0_i32, %c0_i32_0 : i32, i32
  }
  func.func @transform_4(%arg0: i32) -> (i32, i32) {
    %c0_i32 = arith.constant 0 : i32
    %c0_i32_0 = arith.constant 0 : i32
    %c0_i32_1 = arith.constant 0 : i32
    return %c0_i32, %c0_i32_0 : i32, i32
  }
  func.func @transform_5(%arg0: i32) -> (i32, i32) {
    %c0_i32 = arith.constant 0 : i32
    %c0_i32_0 = arith.constant 0 : i32
    return %arg0, %c0_i32 : i32, i32
  }
}

</mosaic_0001>

<bundles_post_ra>
// kernel: t5_model.6
= control target key start
LH: loop header
LB: loop body
LE: loop exit
PB: predicated region body
PF: predicated region fallthrough
CT: control target
= control target key end

     0   :  { %vm25_vm0 = vcmask 261120   ;;  %vm144_vm1 = vcmask 523264   ;;  %s447_s0 = inlined_call_operand.vmem [shape: f32[16,32], index: 0, kind: input, shape index: {}]   ;;  %s448_s2 = inlined_call_operand.vmem [shape: f32[32,64], index: 2, kind: input, shape index: {}]   ;;  %s449_s3 = inlined_call_operand.vmem [shape: f32[64,32], index: 3, kind: input, shape index: {}]   ;;  %s450_s1 = inlined_call_operand.vmem [shape: f32[1,32], index: 1, kind: input, shape index: {}]   ;;  %s451_s4 = inlined_call_operand.vmem [shape: f32[1,32], index: 4, kind: input, shape index: {}]   ;;  %s452_s5 = inlined_call_operand.vmem [shape: f32[16,32], index: 5, kind: output, shape index: {}]  }
   0x1   :  { %v376_v0 = vld [vmem:[%s447_s0] sm:$0xff]  ;;  %v381_v1 = vld [vmem:[%s447_s0 + $0x8] sm:$0xff]  ;;  %v51_v8 = vld [vmem:[%s448_s2 + $0x10] sm:$0xff] }
   0x2   :  { %v23_v2 = vmul.f32 %v376_v0, %v376_v0  ;;  %v24_v3 = vmul.f32 %v381_v1, %v381_v1  ;;  %v49_v6 = vld [vmem:[%s448_s2] sm:$0xff]  ;;  %v50_v7 = vld [vmem:[%s448_s2 + $0x8] sm:$0xff]  ;;  %v52_v10 = vld [vmem:[%s448_s2 + $0x18] sm:$0xff] }
   0x3   :  { %v311_v9 = vpack.c.bf16 %v50_v7, %v49_v6  ;;  %v315_v11 = vpack.c.bf16 %v52_v10, %v51_v8  ;;  %v136_v12 = vld [vmem:[%s449_s3] sm:$0xff]  ;;  %v137_v13 = vld [vmem:[%s449_s3 + $0x8] sm:$0xff]  ;;  %v138_v14 = vld [vmem:[%s449_s3 + $0x10] sm:$0xff] }
   0x4   :  { %v26_v4 = vsel %vm25_vm0, %v23_v2, 0.0  ;;  %v29_v5 = vsel %vm25_vm0, %v24_v3, 0.0  ;;  %v319_v15 = vpack.c.bf16 %v137_v13, %v136_v12  ;;  %v139_v16 = vld [vmem:[%s449_s3 + $0x18] sm:$0xff]  ;;  %v140_v18 = vld [vmem:[%s449_s3 + $0x20] sm:$0xff]  ;;  %v141_v19 = vld [vmem:[%s449_s3 + $0x28] sm:$0xff] }
   0x5   :  { %27 = vadd.xlane.f32.xlu0 %v26_v4  ;;  %312 = vmatprep.subr.bf16.mxu0 %v311_v9  ;;  %v323_v17 = vpack.c.bf16 %v139_v16, %v138_v14  ;;  %v327_v20 = vpack.c.bf16 %v141_v19, %v140_v18  ;;  %v259_v28 = vld [vmem:[%s450_s1] ss:$0 sm:$0xff]  ;;  %v142_v34 = vld [vmem:[%s449_s3 + $0x30] sm:$0xff]  ;;  %v143_v35 = vld [vmem:[%s449_s3 + $0x38] sm:$0xff] }
   0x6   :  { %314 = vmatpush3.bf16.msra.mxu0 %v311_v9  ;;  %320 = vmatprep.subr.bf16.mxu1 %v319_v15  ;;  %v331_v36 = vpack.c.bf16 %v143_v35, %v142_v34  ;;  %v264_v56 = vld [vmem:[%s451_s4] ss:$0 sm:$0xff] }
   0x7   :  { %316 = vmatprep.subr.bf16.mxu0 %v315_v11  ;;  %322 = vmatpush3.bf16.msra.mxu1 %v319_v15 }
   0x8   :  { %324 = vmatprep.subr.bf16.mxu1 %v323_v17 }
   0x9   :  { %30 = vadd.xlane.f32.xlu0 %v29_v5 }
   0xa   :  { %318 = vmatpush3.bf16.msra.mxu0 %v315_v11 }
   0xb   :  { %326 = vmatpush3.bf16.msra.mxu1 %v323_v17 }
   0xc   :  { %328 = vmatprep.subr.bf16.mxu1 %v327_v20 }
   0xf   :  { %330 = vmatpush3.bf16.msra.mxu1 %v327_v20 }
  0x10   :  { %332 = vmatprep.subr.bf16.mxu1 %v331_v36 }
  0x13   :  { %334 = vmatpush3.bf16.msra.mxu1 %v331_v36 }
  0x92   :  { %v28_v21 = vpop.xlane.xlu0 %27 }
  0x93   :  { %v33_v22 = vmul.f32 0.03125, %v28_v21 }
  0x95   :  { %v35_v23 = vadd.f32 1e-06, %v33_v22 }
  0x96   :  { %v31_v24 = vpop.xlane.xlu0 %30 }
  0x97   :  { %335 = vrsqrt.f32 %v35_v23  ;;  %v34_v25 = vmul.f32 0.03125, %v31_v24 }
  0x99   :  { %v36_v26 = vadd.f32 1e-06, %v34_v25 }
  0x9b   :  { %337 = vrsqrt.f32 %v36_v26 }
  0xa1   :  { %v336_v27 = vpop.eup %335 }
  0xa2   :  { %v39_v29 = vmul.f32 %v336_v27, %v376_v0 }
  0xa4   :  { %v47_v30 = vmul.f32 %v259_v28, %v39_v29 }
  0xa5   :  { %v338_v31 = vpop.eup %337 }
  0xa6   :  { %v40_v32 = vmul.f32 %v338_v31, %v381_v1  ;;  %289 = vmatprep.mubr.msk.f32.mxu0 %vm25_vm0, %v47_v30 }
  0xa8   :  { %v48_v33 = vmul.f32 %v259_v28, %v40_v32 }
  0xaa   :  { %290 = vmatmul.mubr.msk.f32.vlgmr.msra.gmra.mrb[0].mxu0 %vm25_vm0, %v48_v33 }
 0x17d   :  { %v291_v37 = vpop.f32.mrb[0].mxu0 }
 0x17e   :  { %v125_v38 = vpop.f32.mrb[1].mxu0  ;;  %v135_v40 = vmax.f32 %v291_v37, 0.0 }
 0x17f   :  { %v134_v39 = vmax.f32 %v125_v38, 0.0 }
 0x181   :  { %308 = vmatprep.mubr.msk.f32.mxu1 %vm144_vm1, %v134_v39 }
 0x182   :  { %309 = vmatmul.mubr.msk.f32.vlgmr.msra.gmra.mrb[0].mxu1 %vm144_vm1, %v135_v40 }
 0x255   :  { %v310_v41 = vpop.f32.mrb[0].mxu1 }
 0x256   :  { %v217_v42 = vpop.f32.mrb[1].mxu1  ;;  %v227_v43 = vadd.f32 %v310_v41, %v381_v1 }
 0x257   :  { %v226_v44 = vadd.f32 %v217_v42, %v376_v0 }
 0x258   :  { %v230_v47 = vmul.f32 %v227_v43, %v227_v43 }
 0x259   :  { %v229_v45 = vmul.f32 %v226_v44, %v226_v44 }
 0x25a   :  { %v234_v48 = vsel %vm25_vm0, %v230_v47, 0.0 }
 0x25b   :  { %v231_v46 = vsel %vm25_vm0, %v229_v45, 0.0 }
 0x25c   :  { %232 = vadd.xlane.f32.xlu1 %v231_v46 }
 0x260   :  { %235 = vadd.xlane.f32.xlu1 %v234_v48 }
 0x2e9   :  { %v233_v49 = vpop.xlane.xlu1 %232 }
 0x2ea   :  { %v237_v50 = vmul.f32 0.03125, %v233_v49 }
 0x2ec   :  { %v239_v51 = vadd.f32 1e-06, %v237_v50 }
 0x2ed   :  { %v236_v52 = vpop.xlane.xlu1 %235 }
 0x2ee   :  { %339 = vrsqrt.f32 %v239_v51  ;;  %v238_v53 = vmul.f32 0.03125, %v236_v52 }
 0x2f0   :  { %v240_v54 = vadd.f32 1e-06, %v238_v53 }
 0x2f2   :  { %341 = vrsqrt.f32 %v240_v54 }
 0x2f8   :  { %v340_v55 = vpop.eup %339 }
 0x2f9   :  { %v243_v57 = vmul.f32 %v340_v55, %v226_v44 }
 0x2fb   :  { %v251_v58 = vmul.f32 %v264_v56, %v243_v57 }
 0x2fc   :  { %v342_v59 = vpop.eup %341 }
 0x2fd   :  { %253 = vst.msk [vmem:[%s452_s5] sm:$0xff] %vm25_vm0, %v251_v58  ;;  %v244_v60 = vmul.f32 %v342_v59, %v227_v43 }
 0x2ff   :  { %v252_v61 = vmul.f32 %v264_v56, %v244_v60 }
 0x301   :  { %254 = vst.msk [vmem:[%s452_s5 + $0x8] sm:$0xff] %vm25_vm0, %v252_v61 }

// kernel: t5_model.9
= control target key start
LH: loop header
LB: loop body
LE: loop exit
PB: predicated region body
PF: predicated region fallthrough
CT: control target
= control target key end

     0   :  { %vm26_vm0 = vcmask 261120   ;;  %s496_s0 = inlined_call_operand.vmem [shape: f32[16,32], index: 0, kind: input, shape index: {}]   ;;  %s497_s1 = inlined_call_operand.vmem [shape: f32[1,32], index: 1, kind: input, shape index: {}]   ;;  %s498_s2 = inlined_call_operand.vmem [shape: f32[32,64], index: 2, kind: input, shape index: {}]   ;;  %s499_s3 = inlined_call_operand.vmem [shape: f32[64,32], index: 3, kind: input, shape index: {}]   ;;  %s500_s4 = inlined_call_operand.vmem [shape: f32[1,32], index: 4, kind: input, shape index: {}]   ;;  %s501_s5 = inlined_call_operand.hbm [shape: f32[16,32], index: 5, kind: output, shape index: {}]  }
   0x1   :  { %v419_v0 = vld [vmem:[%s496_s0] sm:$0xff]  ;;  %v424_v1 = vld [vmem:[%s496_s0 + $0x8] sm:$0xff] }
   0x2   :  { %10 = vsyncpa [#allocation3], 0  ;;  %v24_v2 = vmul.f32 %v419_v0, %v419_v0  ;;  %v25_v3 = vmul.f32 %v424_v1, %v424_v1  ;;  %v50_v6 = vld [vmem:[%s498_s2] sm:$0xff]  ;;  %v51_v7 = vld [vmem:[%s498_s2 + $0x8] sm:$0xff]  ;;  %vm145_vm1 = vcmask 523264   ;;  %s383_s21 = smov [#allocation2]  }
   0x3   :  { %v52_v8 = vld [vmem:[%s498_s2 + $0x10] sm:$0xff]  ;;  %v324_v9 = vpack.c.bf16 %v51_v7, %v50_v6  ;;  %v53_v10 = vld [vmem:[%s498_s2 + $0x18] sm:$0xff]  ;;  %v137_v12 = vld [vmem:[%s499_s3] sm:$0xff]  ;;  %s261_s22 = sshll.u32 %s383_s21, 4  ;;  %s262_s22 = int_to_ptr.vmem [resolvable:$true] %s261_s22 }
   0x4   :  { %v27_v4 = vsel %vm26_vm0, %v24_v2, 0.0  ;;  %v30_v5 = vsel %vm26_vm0, %v25_v3, 0.0  ;;  %v328_v11 = vpack.c.bf16 %v53_v10, %v52_v8  ;;  %v138_v13 = vld [vmem:[%s499_s3 + $0x8] sm:$0xff]  ;;  %v139_v14 = vld [vmem:[%s499_s3 + $0x10] sm:$0xff]  ;;  %v140_v16 = vld [vmem:[%s499_s3 + $0x18] sm:$0xff]  ;;  %s359_s23 = scalar_lea.vmem %s262_s22, 256  ;;  %p364_p1 = scmp.lt.s32.totalorder %s262_s22, %s262_s22 }
   0x5   :  { %28 = vadd.xlane.f32.xlu0 %v27_v4  ;;  %325 = vmatprep.subr.bf16.mxu0 %v324_v9  ;;  %v332_v15 = vpack.c.bf16 %v138_v13, %v137_v12  ;;  %v336_v17 = vpack.c.bf16 %v140_v16, %v139_v14  ;;  %v141_v18 = vld [vmem:[%s499_s3 + $0x20] sm:$0xff]  ;;  %v142_v19 = vld [vmem:[%s499_s3 + $0x28] sm:$0xff]  ;;  %v143_v34 = vld [vmem:[%s499_s3 + $0x30] sm:$0xff]  ;;  %p360_p0 = scmp.ne.s32.totalorder %s262_s22, %s359_s23  ;;  %p365_p2 = scmp.lt.s32.totalorder %s359_s23, %s359_s23 }
   0x6   :  { %327 = vmatpush3.bf16.msra.mxu0 %v324_v9  ;;  %v340_v20 = vpack.c.bf16 %v142_v19, %v141_v18  ;;  %v272_v28 = vld [vmem:[%s497_s1] ss:$0 sm:$0xff]  ;;  %v144_v35 = vld [vmem:[%s499_s3 + $0x38] sm:$0xff] }
   0x7   :  { %329 = vmatprep.subr.bf16.mxu0 %v328_v11  ;;  %333 = vmatprep.subr.bf16.mxu1 %v332_v15  ;;  %v344_v36 = vpack.c.bf16 %v144_v35, %v143_v34  ;;  %v277_v56 = vld [vmem:[%s500_s4] ss:$0 sm:$0xff]  ;;  %p366_p3 = por %p365_p2, %p364_p1 }
   0x8   :  { %335 = vmatpush3.bf16.msra.mxu1 %v332_v15 }
   0x9   :  { %31 = vadd.xlane.f32.xlu0 %v30_v5  ;;  %337 = vmatprep.subr.bf16.mxu1 %v336_v17  ;;  %p367_p4 = pnand %p366_p3, %p360_p0 }
   0xa   :  { %331 = vmatpush3.bf16.msra.mxu0 %v328_v11 }
   0xc   :  { %339 = vmatpush3.bf16.msra.mxu1 %v336_v17 }
   0xd   :  { %341 = vmatprep.subr.bf16.mxu1 %v340_v20 }
  0x10   :  { %343 = vmatpush3.bf16.msra.mxu1 %v340_v20 }
  0x11   :  { %345 = vmatprep.subr.bf16.mxu1 %v344_v36 }
  0x14   :  { %347 = vmatpush3.bf16.msra.mxu1 %v344_v36 }
  0x92   :  { %v29_v21 = vpop.xlane.xlu0 %28 }
  0x93   :  { %v34_v22 = vmul.f32 0.03125, %v29_v21 }
  0x95   :  { %v36_v23 = vadd.f32 1e-06, %v34_v22 }
  0x96   :  { %v32_v24 = vpop.xlane.xlu0 %31 }
  0x97   :  { %351 = vrsqrt.f32 %v36_v23  ;;  %v35_v25 = vmul.f32 0.03125, %v32_v24 }
  0x99   :  { %v37_v26 = vadd.f32 1e-06, %v35_v25 }
  0x9b   :  { %353 = vrsqrt.f32 %v37_v26 }
  0xa1   :  { %v352_v27 = vpop.eup %351 }
  0xa2   :  { %v40_v29 = vmul.f32 %v352_v27, %v419_v0 }
  0xa4   :  { %v48_v30 = vmul.f32 %v272_v28, %v40_v29 }
  0xa5   :  { %v354_v31 = vpop.eup %353 }
  0xa6   :  { %v41_v32 = vmul.f32 %v354_v31, %v424_v1  ;;  %302 = vmatprep.mubr.msk.f32.mxu0 %vm26_vm0, %v48_v30 }
  0xa8   :  { %v49_v33 = vmul.f32 %v272_v28, %v41_v32 }
  0xaa   :  { %303 = vmatmul.mubr.msk.f32.vlgmr.msra.gmra.mrb[0].mxu0 %vm26_vm0, %v49_v33 }
 0x17d   :  { %v304_v37 = vpop.f32.mrb[0].mxu0 }
 0x17e   :  { %v126_v38 = vpop.f32.mrb[1].mxu0  ;;  %v136_v40 = vmax.f32 %v304_v37, 0.0 }
 0x17f   :  { %v135_v39 = vmax.f32 %v126_v38, 0.0 }
 0x181   :  { %321 = vmatprep.mubr.msk.f32.mxu1 %vm145_vm1, %v135_v39 }
 0x182   :  { %322 = vmatmul.mubr.msk.f32.vlgmr.msra.gmra.mrb[0].mxu1 %vm145_vm1, %v136_v40 }
 0x255   :  { %v323_v41 = vpop.f32.mrb[0].mxu1 }
 0x256   :  { %v218_v42 = vpop.f32.mrb[1].mxu1  ;;  %v228_v43 = vadd.f32 %v323_v41, %v424_v1 }
 0x257   :  { %v227_v44 = vadd.f32 %v218_v42, %v419_v0 }
 0x258   :  { %v231_v47 = vmul.f32 %v228_v43, %v228_v43 }
 0x259   :  { %v230_v45 = vmul.f32 %v227_v44, %v227_v44 }
 0x25a   :  { %v235_v48 = vsel %vm26_vm0, %v231_v47, 0.0 }
 0x25b   :  { %v232_v46 = vsel %vm26_vm0, %v230_v45, 0.0 }
 0x25c   :  { %233 = vadd.xlane.f32.xlu1 %v232_v46 }
 0x260   :  { %236 = vadd.xlane.f32.xlu1 %v235_v48 }
 0x2e9   :  { %v234_v49 = vpop.xlane.xlu1 %233 }
 0x2ea   :  { %v238_v50 = vmul.f32 0.03125, %v234_v49 }
 0x2ec   :  { %v240_v51 = vadd.f32 1e-06, %v238_v50 }
 0x2ed   :  { %v237_v52 = vpop.xlane.xlu1 %236 }
 0x2ee   :  { %355 = vrsqrt.f32 %v240_v51  ;;  %v239_v53 = vmul.f32 0.03125, %v237_v52 }
 0x2f0   :  { %v241_v54 = vadd.f32 1e-06, %v239_v53 }
 0x2f2   :  { %357 = vrsqrt.f32 %v241_v54 }
 0x2f8   :  { %v356_v55 = vpop.eup %355 }
 0x2f9   :  { %v244_v57 = vmul.f32 %v356_v55, %v227_v44 }
 0x2fb   :  { %v252_v58 = vmul.f32 %v277_v56, %v244_v57 }
 0x2fc   :  { %v358_v59 = vpop.eup %357 }
 0x2fd   :  { %v245_v60 = vmul.f32 %v358_v59, %v228_v43  ;;  %254 = vst.msk [vmem:[#allocation2] sm:$0xff] %vm26_vm0, %v252_v58 }
 0x2ff   :  { %v253_v61 = vmul.f32 %v277_v56, %v245_v60 }
 0x301   :  { %255 = vst.msk [vmem:[#allocation2 + $0x8] sm:$0xff] %vm26_vm0, %v253_v61 }
 0x302   :  { %370 = shalt.err (!%p367_p4)
}
 0x303   :  { %s371_s0 = scalar_lea.hbm %s501_s5, 256 }
 0x304   :  { %p372_p5 = scmp.ne.s32.totalorder %s501_s5, %s371_s0  ;;  %p375_p6 = scmp.lt.u32.totalorder %s371_s0, %s501_s5 }
 0x306   :  { %p377_p7 = pnand %p375_p6, %p372_p5 }
 0x308   :  { %380 = shalt.err (!%p377_p7)
}
 0x309   :  { %s384_s29 = smov 128   ;;  %s385_s30 = smov 8  }
 0x30a   :  { %267 = dma.vmem_to_hbm [thread:$0]  %s262_s22, 256, %s501_s5, [#allocation3], %s384_s29, %s384_s29, %s385_s30  }
 0x30b   :  { %381 = dma.done.wait [#allocation3], 256  }
 0x30c   :  { %382 = vsyncadd [#allocation3], 4294967040 }
 0x30d   :  { %271 = vsyncpa [#allocation3], 1 }

// kernel: t5_model.7
= control target key start
LH: loop header
LB: loop body
LE: loop exit
PB: predicated region body
PF: predicated region fallthrough
CT: control target
= control target key end

     0   :  { %s1544_s24 = smov 0   ;;  %s1701_s0 = inlined_call_operand.vmem [shape: f32[2,8,32], index: 0, kind: input, shape index: {}]   ;;  %s1702_s1 = inlined_call_operand.vmem [shape: f32[1,32], index: 1, kind: input, shape index: {}]   ;;  %s1703_s2 = inlined_call_operand.vmem [shape: f32[32,32], index: 2, kind: input, shape index: {}]   ;;  %s1704_s3 = inlined_call_operand.vmem [shape: f32[32,64], index: 3, kind: input, shape index: {}]   ;;  %s1705_s4 = inlined_call_operand.vmem [shape: f32[32,32], index: 4, kind: input, shape index: {}]   ;;  %s1706_s5 = inlined_call_operand.vmem [shape: f32[4,8,8], index: 5, kind: input, shape index: {}]   ;;  %s1707_s6 = inlined_call_operand.vmem [shape: f32[2,1,8], index: 6, kind: input, shape index: {}]   ;;  %s1708_s7 = inlined_call_operand.vmem [shape: f32[2,8,32], index: 7, kind: output, shape index: {}]  }
   0x1 LB: > { %s1293_s25 = sadd.s32 4294967295, %s1489_s24   ;;  %p1297_p0 = scmp.ge.s32.totalorder %s1489_s24, 1  ;;  %s1489_s24 = sphi %s1544_s24, %s17_s24  }
   0x2   : > { %p244_p1 = scmp.lt.s32.totalorder %s1489_s24, 3 }
   0x4   : > { %p245_p2 = pnand %p1297_p0, %p244_p1 }
   0x5   : > { %p277_p3 = scmp.lt.s32.totalorder (!%p245_p2), %s1293_s25, 1  ;;  %vm291_vm0 = vcmask (!%p245_p2), 261120   ;;  %v307_v3 = vld [vmem:[%s1703_s2] sm:$0xff] (!%p245_p2)  ;;  %v308_v4 = vld [vmem:[%s1703_s2 + $0x8] sm:$0xff] (!%p245_p2)  ;;  %v1491_v6 = vmov (!%p245_p2), 0.0|0.0   ;;  %v309_v9 = vld [vmem:[%s1703_s2 + $0x10] sm:$0xff] (!%p245_p2) }
   0x6   : > { %248 = sbr.rel (%p245_p2) target bundleno = 1598 (0x63e), region = 48  ;;  %v384_v5 = vld [vmem:[%s1704_s3] sm:$0xff] (!%p245_p2)  ;;  %1426 = vmatprep.subr.bf16.mxu0 (!%p245_p2), %v1491_v6  ;;  %1432 = vmatprep.subr.bf16.mxu1 (!%p245_p2), %v1491_v6  ;;  %v1427_v7 = vpack.c.bf16 (!%p245_p2), %v308_v4, %v307_v3  ;;  %v385_v8 = vld [vmem:[%s1704_s3 + $0x8] sm:$0xff] (!%p245_p2)  ;;  %v310_v10 = vld [vmem:[%s1703_s2 + $0x18] sm:$0xff] (!%p245_p2)  ;;  %vm1492_vm1 = vmmov (!%p245_p2), 0   ;;  %v1493_v14 = vmov (!%p245_p2), 0.0  }
   0x7   : > { %v1433_v11 = vpack.c.bf16 (!%p245_p2), %v385_v8, %v384_v5  ;;  %v386_v12 = vld [vmem:[%s1704_s3 + $0x10] sm:$0xff] (!%p245_p2)  ;;  %v387_v13 = vld [vmem:[%s1704_s3 + $0x18] sm:$0xff] (!%p245_p2)  ;;  %1361 = vmatprep.mubr.msk.f32.mxu0 (!%p245_p2), %vm1492_vm1, %v1493_v14  ;;  %1372 = vmatprep.mubr.msk.f32.mxu1 (!%p245_p2), %vm1492_vm1, %v1493_v14  ;;  %v1430_v15 = vpack.c.bf16 (!%p245_p2), %v310_v10, %v309_v9  ;;  %v1300_v21 = vld [vmem:[%s1702_s1] ss:$0 sm:$0xff] (!%p245_p2)  ;;  %vm460_vm2 = vcmask (!%p245_p2), 64512   ;;  %s1494_s28 = smov (!%p245_p2), 120  }
   0x8   : > { %1428 = vmatpush3.bf16.msra.mxu0 (!%p245_p2), %v1427_v7  ;;  %v1436_v16 = vpack.c.bf16 (!%p245_p2), %v387_v13, %v386_v12  ;;  %s1496_s30 = smov (!%p245_p2), 104   ;;  %v459_v34 = vld [vmem:[%s1706_s5] sm:$0xff] (!%p245_p2)  ;;  %v1307_v41 = vld [vmem:[%s1706_s5 + $0x8] sm:$0xff] (!%p245_p2)  ;;  %v1311_v46 = vld [vmem:[%s1706_s5 + $0x10] sm:$0xff] (!%p245_p2)  ;;  %s1497_s19 = smov (!%p245_p2), 96   ;;  %vm1148_vm3 = vcmask (!%p245_p2), 130048  }
   0x9   : > { %1434 = vmatpush3.bf16.msra.mxu1 (!%p245_p2), %v1433_v11  ;;  %1429 = vmatprep.subr.bf16.mxu0 (!%p245_p2), %v1491_v6  ;;  %v1315_v53 = vld [vmem:[%s1706_s5 + $0x18] sm:$0xff] (!%p245_p2)  ;;  %s1498_s20 = smov (!%p245_p2), 80   ;;  %s1499_s21 = smov (!%p245_p2), 72   ;;  %vm1150_vm4 = vcmask (!%p245_p2), 195584  }
   0xa   : > { %1435 = vmatprep.subr.bf16.mxu1 (!%p245_p2), %v1491_v6  ;;  %s1500_s22 = smov (!%p245_p2), 88   ;;  %s1501_s11 = smov (!%p245_p2), 8  }
   0xb   : > { %s1502_s12 = smov (!%p245_p2), 16   ;;  %s1503_s13 = smov (!%p245_p2), 24  }
   0xc   : > { %1431 = vmatpush3.bf16.msra.mxu0 (!%p245_p2), %v1430_v15 }
   0xd   : > { %s1710_s25 = smov (!%p277_p3, %s1293_s25), 1  ;;  %1437 = vmatpush3.bf16.msra.mxu1 %v1436_v16  ;;  %1385 = vmatprep.subr.mxu0 %v1493_v14 }
   0xe   : > { %s1298_s26 = sshll.u32 %s1710_s25, 3  ;;  %1375 = vmatprep.subr.mxu1 %v1493_v14  ;;  %s283_s10 = scalar_lea.vmem %s1707_s6, %s1710_s25 }
   0xf   : > { %s280_s29 = scalar_lea.vmem %s1701_s0, %s1298_s26  ;;  %v1305_v36 = vld [vmem:[%s283_s10] ss:$0 sm:$0xff]  ;;  %s287_s16 = scalar_lea.vmem %s1708_s7, %s1298_s26 }
  0x10   : > { %v1560_v0 = vld [vmem:[%s280_s29] sm:$0xff]  ;;  %s1495_s29 = smov 112  }
  0x11   : > { %v290_v1 = vmul.f32 %v1560_v0, %v1560_v0 }
  0x13   : > { %v292_v2 = vsel %vm291_vm0, %v290_v1, 0.0 }
  0x14   : > { %293 = vadd.xlane.f32.xlu0 %v292_v2 }
  0xa1   : > { %v294_v17 = vpop.xlane.xlu0 %293 }
  0xa2   : > { %v296_v18 = vmul.f32 0.03125, %v294_v17 }
  0xa4   : > { %v297_v19 = vadd.f32 1e-06, %v296_v18 }
  0xa6   : > { %1465 = vrsqrt.f32 %v297_v19 }
  0xb0   : > { %v1466_v20 = vpop.eup %1465 }
  0xb1   : > { %v299_v22 = vmul.f32 %v1466_v20, %v1560_v0 }
  0xb3   : > { %v306_v23 = vmul.f32 %v1300_v21, %v299_v22 }
  0xb5   : > { %1362 = vmatmul.mubr.msk.f32.vlgmr.msra.gmra.mrb[0].mxu0 %vm291_vm0, %v306_v23  ;;  %1373 = vmatmul.mubr.msk.f32.vlgmr.msra.gmra.mrb[0].mxu1 %vm291_vm0, %v306_v23 }
  0xb6   : > { %1377 = vmatprep.mubr.msk.f32.mxu1 %vm1492_vm1, %v1493_v14  ;;  %1387 = vmatprep.mubr.msk.f32.mxu0 %vm1492_vm1, %v1493_v14 }
 0x188   : > { %v380_v24 = vpop.f32.mrb[0].mxu0  ;;  %v1609_v25 = vpop.f32.mrb[0].mxu1 }
 0x189   : > { %635 = vrot.lane.b32.xlu0 %v1609_v25, %s1494_s28  ;;  %v1374_v26 = vpop.f32.mrb[1].mxu1  ;;  %1376 = vmatpush3.xpose.msk.msra.mxu1 %vm460_vm2, %v1609_v25  ;;  %v1363_v27 = vpop.f32.mrb[1].mxu0 }
 0x18a   : > { %633 = vrot.lane.b32.xlu1 %v380_v24, %s1494_s28  ;;  %1380 = vmatprep.subr.mxu1 %v1493_v14 }
 0x18c   : > { %1378 = vmatmul.mubr.msk.f32.vlgmr.msra.gmra.mrb[2].mxu1 %vm460_vm2, %v380_v24 }
 0x18d   : > { %1382 = vmatprep.mubr.msk.f32.mxu1 %vm1492_vm1, %v1493_v14 }
 0x18e   : > { %803 = vrot.lane.b32.xlu1 %v1609_v25, %s1495_s29 }
 0x192   : > { %801 = vrot.lane.b32.xlu1 %v380_v24, %s1495_s29 }
 0x196   : > { %971 = vrot.lane.b32.xlu1 %v1609_v25, %s1496_s30 }
 0x19a   : > { %969 = vrot.lane.b32.xlu1 %v380_v24, %s1496_s30 }
 0x1fb   : > { %v636_v28 = vpop.permute.xlu0 %635 }
 0x1fc   : > { %v634_v29 = vpop.permute.xlu1 %633  ;;  %1386 = vmatpush3.xpose.msk.msra.mxu0 %vm460_vm2, %v636_v28 }
 0x1fd   : > { %1395 = vmatprep.subr.mxu0 %v1493_v14 }
 0x1ff   : > { %1388 = vmatmul.mubr.msk.f32.vlgmr.msra.gmra.mrb[2].mxu0 %vm460_vm2, %v634_v29 }
 0x200   : > { %v804_v30 = vpop.permute.xlu1 %803  ;;  %1397 = vmatprep.mubr.msk.f32.mxu0 %vm1492_vm1, %v1493_v14 }
 0x201   : > { %1396 = vmatpush3.xpose.msk.msra.mxu0 %vm460_vm2, %v804_v30 }
 0x202   : > { %1405 = vmatprep.subr.mxu0 %v1493_v14 }
 0x204   : > { %v802_v31 = vpop.permute.xlu1 %801 }
 0x205   : > { %1398 = vmatmul.mubr.msk.f32.vlgmr.msra.gmra.mrb[4].mxu0 %vm460_vm2, %v802_v31 }
 0x206   : > { %1407 = vmatprep.mubr.msk.f32.mxu0 %vm1492_vm1, %v1493_v14 }
 0x208   : > { %v972_v32 = vpop.permute.xlu1 %971 }
 0x209   : > { %1406 = vmatpush3.xpose.msk.msra.mxu0 %vm460_vm2, %v972_v32 }
 0x20a   : > { %1438 = vmatprep.subr.bf16.mxu0 %v1491_v6 }
 0x20c   : > { %v970_v33 = vpop.permute.xlu1 %969 }
 0x20d   : > { %1408 = vmatmul.mubr.msk.f32.vlgmr.msra.gmra.mrb[6].mxu0 %vm460_vm2, %v970_v33 }
 0x20e   : > { %1423 = vmatprep.mubr.msk.f32.mxu0 %vm1492_vm1, %v1493_v14 }
 0x25f   : > { %v533_v35 = vpop.f32.mrb[2].mxu1 }
 0x260   : > { %v534_v37 = vadd.f32 %v533_v35, %v459_v34  ;;  %v1379_v38 = vpop.f32.mrb[3].mxu1 }
 0x262   : > { %v543_v39 = vadd.f32 %v1305_v36, %v534_v37  ;;  %v1153_v37 = vld [vmem:[%s1705_s4 + $0x8] sm:$0xff] }
 0x264   : > { %v544_v40 = vsel %vm460_vm2, %v543_v39, -inf }
 0x265   : > { %545 = vmax.xlane.f32.xlu1 %v544_v40 }
 0x2d2   : > { %v707_v42 = vpop.f32.mrb[2].mxu0 }
 0x2d3   : > { %v708_v43 = vadd.f32 %v1307_v41, %v707_v42  ;;  %v1389_v44 = vpop.f32.mrb[3].mxu0 }
 0x2d5   : > { %v711_v45 = vadd.f32 %v1305_v36, %v708_v43 }
 0x2d7   : > { %v712_v47 = vsel %vm460_vm2, %v711_v45, -inf }
 0x2d8   : > { %v875_v48 = vpop.f32.mrb[4].mxu0  ;;  %713 = vmax.xlane.f32.xlu0 %v712_v47 }
 0x2d9   : > { %v876_v49 = vadd.f32 %v1311_v46, %v875_v48  ;;  %v1399_v50 = vpop.f32.mrb[5].mxu0 }
 0x2db   : > { %v879_v51 = vadd.f32 %v1305_v36, %v876_v49 }
 0x2dd   : > { %v880_v52 = vsel %vm460_vm2, %v879_v51, -inf }
 0x2de   : > { %881 = vmax.xlane.f32.xlu1 %v880_v52 }
 0x2e0   : > { %v1043_v54 = vpop.f32.mrb[6].mxu0 }
 0x2e1   : > { %v1044_v55 = vadd.f32 %v1315_v53, %v1043_v54  ;;  %v1409_v56 = vpop.f32.mrb[7].mxu0 }
 0x2e3   : > { %v1047_v57 = vadd.f32 %v1305_v36, %v1044_v55  ;;  %v1152_v36 = vld [vmem:[%s1705_s4] sm:$0xff] }
 0x2e4   : > { %v1439_v38 = vpack.c.bf16 %v1153_v37, %v1152_v36 }
 0x2e5   : > { %v1048_v58 = vsel %vm460_vm2, %v1047_v57, -inf }
 0x2e6   : > { %1049 = vmax.xlane.f32.xlu0 %v1048_v58  ;;  %1440 = vmatpush3.bf16.msra.mxu0 %v1439_v38 }
 0x2e7   : > { %1441 = vmatprep.subr.bf16.mxu0 %v1491_v6 }
 0x2ef   : > { %555 = vrot.lane.b32.xlu1 %v1609_v25, %s1497_s19 }
 0x2f2   : > { %v546_v59 = vpop.xlane.xlu1 %545 }
 0x2f3   : > { %v547_v60 = vsub.f32 %v543_v39, %v546_v59  ;;  %v1155_v39 = vld [vmem:[%s1705_s4 + $0x18] sm:$0xff] }
 0x2f5   : > { %v548_v61 = vmul.f32 1.442695, %v547_v60 }
 0x2f7   : > { %1467 = vpow2.f32 %v548_v61 }
 0x301   : > { %v1468_v62 = vpop.eup %1467 }
 0x302   : > { %v550_v63 = vsel %vm460_vm2, %v1468_v62, 0.0 }
 0x313   : > { %551 = vadd.xlane.f32.xlu1 %v550_v63 }
 0x365   : > { %v714_v1 = vpop.xlane.xlu0 %713 }
 0x366   : > { %v715_v2 = vsub.f32 %v711_v45, %v714_v1 }
 0x368   : > { %v716_v3 = vmul.f32 1.442695, %v715_v2 }
 0x36a   : > { %1469 = vpow2.f32 %v716_v3 }
 0x36b   : > { %v882_v4 = vpop.xlane.xlu1 %881 }
 0x36c   : > { %v883_v5 = vsub.f32 %v879_v51, %v882_v4 }
 0x36e   : > { %v884_v7 = vmul.f32 1.442695, %v883_v5 }
 0x36f   : > { %v556_v8 = vpop.permute.xlu1 %555 }
 0x370   : > { %1471 = vpow2.f32 %v884_v7  ;;  %1381 = vmatpush3.msra.mxu1 %v556_v8 }
 0x371   : > { %1390 = vmatprep.subr.mxu1 %v1493_v14 }
 0x373   : > { %v1050_v9 = vpop.xlane.xlu0 %1049 }
 0x374   : > { %v1470_v10 = vpop.eup %1469  ;;  %v1051_v11 = vsub.f32 %v1047_v57, %v1050_v9 }
 0x375   : > { %v718_v12 = vsel %vm460_vm2, %v1470_v10, 0.0 }
 0x376   : > { %v1052_v13 = vmul.f32 1.442695, %v1051_v11  ;;  %719 = vadd.xlane.f32.xlu0 %v718_v12 }
 0x378   : > { %1473 = vpow2.f32 %v1052_v13 }
 0x37a   : > { %v1472_v15 = vpop.eup %1471 }
 0x37b   : > { %v886_v16 = vsel %vm460_vm2, %v1472_v15, 0.0 }
 0x37c   : > { %887 = vadd.xlane.f32.xlu1 %v886_v16 }
 0x382   : > { %v1474_v17 = vpop.eup %1473 }
 0x383   : > { %v1054_v18 = vsel %vm460_vm2, %v1474_v17, 0.0 }
 0x384   : > { %1055 = vadd.xlane.f32.xlu0 %v1054_v18 }
 0x38d   : > { %891 = vrot.lane.b32.xlu1 %v1609_v25, %s1498_s20 }
 0x391   : > { %1059 = vrot.lane.b32.xlu1 %v1609_v25, %s1499_s21 }
 0x39a   : > { %723 = vrot.lane.b32.xlu0 %v1609_v25, %s1500_s22 }
 0x3a0   : > { %v552_v19 = vpop.xlane.xlu1 %551 }
 0x3a1   : > { %1475 = vrcp.f32 %v552_v19 }
 0x3ab   : > { %v1476_v20 = vpop.eup %1475 }
 0x3ac   : > { %v554_v21 = vmul.f32 %v1476_v20, %v1468_v62 }
 0x3ae   : > { %1383 = vmatmul.mubr.msk.f32.vlgmr.msra.gmra.mrb[4].mxu1 %vm460_vm2, %v554_v21 }
 0x3af   : > { %1392 = vmatprep.mubr.msk.f32.mxu1 %vm1492_vm1, %v1493_v14 }
 0x403   : > { %v720_v22 = vpop.xlane.xlu0 %719 }
 0x404   : > { %1477 = vrcp.f32 %v720_v22 }
 0x409   : > { %v888_v23 = vpop.xlane.xlu1 %887 }
 0x40a   : > { %1479 = vrcp.f32 %v888_v23 }
 0x40d   : > { %v892_v28 = vpop.permute.xlu1 %891 }
 0x40e   : > { %v1478_v26 = vpop.eup %1477 }
 0x40f   : > { %v722_v27 = vmul.f32 %v1478_v26, %v1470_v10 }
 0x411   : > { %v1056_v24 = vpop.xlane.xlu0 %1055  ;;  %v1060_v31 = vpop.permute.xlu1 %1059 }
 0x412   : > { %1481 = vrcp.f32 %v1056_v24 }
 0x414   : > { %v1480_v25 = vpop.eup %1479 }
 0x415   : > { %v724_v29 = vpop.permute.xlu0 %723  ;;  %v890_v30 = vmul.f32 %v1480_v25, %v1472_v15 }
 0x416   : > { %1391 = vmatpush3.msra.mxu1 %v724_v29 }
 0x417   : > { %1393 = vmatmul.mubr.msk.f32.vlgmr.msra.gmra.mrb[6].mxu1 %vm460_vm2, %v722_v27  ;;  %1400 = vmatprep.subr.mxu1 %v1493_v14 }
 0x418   : > { %1401 = vmatpush3.msra.mxu1 %v892_v28  ;;  %1402 = vmatprep.mubr.msk.f32.mxu1 %vm1492_vm1, %v1493_v14 }
 0x419   : > { %1410 = vmatprep.subr.mxu1 %v1493_v14 }
 0x41b   : > { %1403 = vmatmul.mubr.msk.f32.vlgmr.msra.gmra.mrb[8].mxu1 %vm460_vm2, %v890_v30 }
 0x41c   : > { %v1482_v32 = vpop.eup %1481  ;;  %1411 = vmatpush3.msra.mxu1 %v1060_v31  ;;  %1412 = vmatprep.mubr.msk.f32.mxu1 %vm1492_vm1, %v1493_v14  ;;  %v1154_v14 = vld [vmem:[%s1705_s4 + $0x10] sm:$0xff] }
 0x41d   : > { %v1058_v33 = vmul.f32 %v1482_v32, %v1474_v17  ;;  %v1442_v40 = vpack.c.bf16 %v1155_v39, %v1154_v14 }
 0x41f   : > { %1413 = vmatmul.mubr.msk.f32.vlgmr.msra.gmra.mrb[10].mxu1 %vm460_vm2, %v1058_v33  ;;  %1443 = vmatpush3.bf16.msra.mxu0 %v1442_v40 }
 0x481   : > { %v627_v34 = vpop.f32.mrb[4].mxu1 }
 0x482   : > { %v1384_v35 = vpop.f32.mrb[5].mxu1 }
 0x4ea   : > { %v795_v41 = vpop.f32.mrb[6].mxu1 }
 0x4eb   : > { %1136 = vrot.lane.b32.xlu0 %v795_v41, %s1501_s11  ;;  %v1394_v42 = vpop.f32.mrb[7].mxu1 }
 0x4ee   : > { %v963_v43 = vpop.f32.mrb[8].mxu1 }
 0x4ef   : > { %1140 = vrot.lane.b32.xlu1 %v963_v43, %s1502_s12  ;;  %v1404_v44 = vpop.f32.mrb[9].mxu1 }
 0x4f2   : > { %v1131_v6 = vpop.f32.mrb[10].mxu1 }
 0x4f3   : > { %1144 = vrot.lane.b32.xlu0 %v1131_v6, %s1503_s13  ;;  %v1414_v45 = vpop.f32.mrb[11].mxu1 }
 0x55d   : > { %v1137_v46 = vpop.permute.xlu0 %1136 }
 0x55e   : > { %v1147_v48 = vsel %vm460_vm2, %v627_v34, %v1137_v46 }
 0x561   : > { %v1141_v47 = vpop.permute.xlu1 %1140 }
 0x562   : > { %v1149_v49 = vsel %vm1148_vm3, %v1147_v48, %v1141_v47 }
 0x565   : > { %v1145_v50 = vpop.permute.xlu0 %1144 }
 0x566   : > { %v1151_v51 = vsel %vm1150_vm4, %v1149_v49, %v1145_v50 }
 0x567   : > { %1424 = vmatmul.mubr.msk.f32.vlgmr.msra.gmra.mrb[8].mxu0 %vm291_vm0, %v1151_v51 }
 0x63a   : > { %v1225_v52 = vpop.f32.mrb[8].mxu0 }
 0x63b   : > { %v1229_v53 = vadd.f32 %v1225_v52, %v1560_v0  ;;  %v1425_v54 = vpop.f32.mrb[9].mxu0 }
 0x63d   : > { %1230 = vst.msk [vmem:[%s287_s16] sm:$0xff] %vm291_vm0, %v1229_v53 }
 0x63e PF: > { %s17_s24 = sadd.s32 1, %s1489_s24  }
 0x63f   : > { %p14_p4 = scmp.ge.s32.totalorder %s17_s24, 4  }
 0x641   :  { %16 = sbr.rel (!%p14_p4) target bundleno = 1 (0x1), region = 84 }

// kernel: t5_model.8
= control target key start
LH: loop header
LB: loop body
LE: loop exit
PB: predicated region body
PF: predicated region fallthrough
CT: control target
= control target key end

     0   :  { %s1610_s27 = smov 0   ;;  %s1771_s0 = inlined_call_operand.vmem [shape: f32[2,8,32], index: 0, kind: input, shape index: {}]   ;;  %s1772_s1 = inlined_call_operand.vmem [shape: f32[2,8,32], index: 1, kind: input, shape index: {}]   ;;  %s1773_s2 = inlined_call_operand.vmem [shape: f32[1,32], index: 2, kind: input, shape index: {}]   ;;  %s1774_s3 = inlined_call_operand.vmem [shape: f32[32,32], index: 3, kind: input, shape index: {}]   ;;  %s1775_s4 = inlined_call_operand.vmem [shape: f32[32,64], index: 4, kind: input, shape index: {}]   ;;  %s1776_s5 = inlined_call_operand.vmem [shape: f32[32,32], index: 5, kind: input, shape index: {}]   ;;  %s1777_s6 = inlined_call_operand.vmem [shape: f32[4,8,8], index: 6, kind: input, shape index: {}]   ;;  %s1778_s7 = inlined_call_operand.vmem [shape: f32[2,1,8], index: 7, kind: input, shape index: {}]   ;;  %s1779_s8 = inlined_call_operand.vmem [shape: f32[2,8,32], index: 8, kind: output, shape index: {}]  }
   0x1 LB: > { %s1353_s28 = sadd.s32 4294967295, %s1550_s27   ;;  %p1357_p0 = scmp.ge.s32.totalorder %s1550_s27, 1  ;;  %s1550_s27 = sphi %s1610_s27, %s18_s27  }
   0x2   : > { %p278_p1 = scmp.lt.s32.totalorder %s1550_s27, 3 }
   0x4   : > { %p279_p2 = pnand %p1357_p0, %p278_p1 }
   0x5   : > { %p317_p3 = scmp.lt.s32.totalorder (!%p279_p2), %s1353_s28, 1  ;;  %v1552_v0 = vmov (!%p279_p2), 0.0|0.0   ;;  %vm335_vm0 = vcmask (!%p279_p2), 261120   ;;  %v429_v4 = vld [vmem:[%s1775_s4] sm:$0xff] (!%p279_p2)  ;;  %v430_v5 = vld [vmem:[%s1775_s4 + $0x8] sm:$0xff] (!%p279_p2)  ;;  %v431_v7 = vld [vmem:[%s1775_s4 + $0x10] sm:$0xff] (!%p279_p2) }
   0x6   : > { %282 = sbr.rel (%p279_p2) target bundleno = 1589 (0x635), region = 52  ;;  %1493 = vmatprep.subr.bf16.mxu1 (!%p279_p2), %v1552_v0  ;;  %1487 = vmatprep.subr.bf16.mxu0 (!%p279_p2), %v1552_v0  ;;  %v1494_v6 = vpack.c.bf16 (!%p279_p2), %v430_v5, %v429_v4  ;;  %v432_v8 = vld [vmem:[%s1775_s4 + $0x18] sm:$0xff] (!%p279_p2)  ;;  %v352_v10 = vld [vmem:[%s1774_s3] sm:$0xff] (!%p279_p2)  ;;  %v353_v11 = vld [vmem:[%s1774_s3 + $0x8] sm:$0xff] (!%p279_p2)  ;;  %vm1553_vm1 = vmmov (!%p279_p2), 0   ;;  %v1554_v13 = vmov (!%p279_p2), 0.0  }
   0x7   : > { %v1497_v9 = vpack.c.bf16 (!%p279_p2), %v432_v8, %v431_v7  ;;  %v354_v12 = vld [vmem:[%s1774_s3 + $0x10] sm:$0xff] (!%p279_p2)  ;;  %1433 = vmatprep.mubr.msk.f32.mxu1 (!%p279_p2), %vm1553_vm1, %v1554_v13  ;;  %v1488_v15 = vpack.c.bf16 (!%p279_p2), %v353_v11, %v352_v10  ;;  %v355_v16 = vld [vmem:[%s1774_s3 + $0x18] sm:$0xff] (!%p279_p2)  ;;  %1422 = vmatprep.mubr.msk.f32.mxu0 (!%p279_p2), %vm1553_vm1, %v1554_v13  ;;  %v1361_v22 = vld [vmem:[%s1773_s2] ss:$0 sm:$0xff] (!%p279_p2)  ;;  %vm508_vm2 = vcmask (!%p279_p2), 64512   ;;  %s1555_s13 = smov (!%p279_p2), 112  }
   0x8   : > { %1495 = vmatpush3.bf16.msra.mxu1 (!%p279_p2), %v1494_v6  ;;  %v1491_v17 = vpack.c.bf16 (!%p279_p2), %v355_v16, %v354_v12  ;;  %s1556_s14 = smov (!%p279_p2), 120   ;;  %s1557_s15 = smov (!%p279_p2), 104   ;;  %v507_v35 = vld [vmem:[%s1777_s6] sm:$0xff] (!%p279_p2)  ;;  %v1368_v42 = vld [vmem:[%s1777_s6 + $0x8] sm:$0xff] (!%p279_p2)  ;;  %v1372_v46 = vld [vmem:[%s1777_s6 + $0x10] sm:$0xff] (!%p279_p2)  ;;  %vm1196_vm3 = vcmask (!%p279_p2), 130048  }
   0x9   : > { %1496 = vmatprep.subr.bf16.mxu1 (!%p279_p2), %v1552_v0  ;;  %1489 = vmatpush3.bf16.msra.mxu0 (!%p279_p2), %v1488_v15  ;;  %v1376_v52 = vld [vmem:[%s1777_s6 + $0x18] sm:$0xff] (!%p279_p2)  ;;  %s1558_s26 = smov (!%p279_p2), 96   ;;  %s1559_s30 = smov (!%p279_p2), 80   ;;  %vm1198_vm4 = vcmask (!%p279_p2), 195584  }
   0xa   : > { %1490 = vmatprep.subr.bf16.mxu0 (!%p279_p2), %v1552_v0  ;;  %s1560_s9 = smov (!%p279_p2), 72   ;;  %s1562_s19 = smov (!%p279_p2), 8  }
   0xb   : > { %s1563_s20 = smov (!%p279_p2), 16  }
   0xc   : > { %1498 = vmatpush3.bf16.msra.mxu1 (!%p279_p2), %v1497_v9 }
   0xd   : > { %s1781_s28 = smov (!%p317_p3, %s1353_s28), 1  ;;  %1436 = vmatprep.subr.mxu1 %v1554_v13  ;;  %1492 = vmatpush3.bf16.msra.mxu0 %v1491_v17 }
   0xe   : > { %s1623_s29 = sshll.u32 %s1781_s28, 3  ;;  %1446 = vmatprep.subr.mxu0 %v1554_v13  ;;  %s327_s18 = scalar_lea.vmem %s1778_s7, %s1781_s28 }
   0xf   : > { %s320_s10 = scalar_lea.vmem %s1771_s0, %s1623_s29  ;;  %s324_s21 = scalar_lea.vmem %s1772_s1, %s1623_s29  ;;  %v1366_v37 = vld [vmem:[%s327_s18] ss:$0 sm:$0xff] }
  0x10   : > { %v1629_v1 = vld [vmem:[%s320_s10] sm:$0xff]  ;;  %s1561_s10 = smov 88   ;;  %s331_s23 = scalar_lea.vmem %s1779_s8, %s1623_s29 }
  0x11   : > { %v334_v2 = vmul.f32 %v1629_v1, %v1629_v1  ;;  %v351_v14 = vld [vmem:[%s324_s21] sm:$0xff]  ;;  %s1564_s21 = smov 24  }
  0x12   : > { %1434 = vmatmul.mubr.msk.f32.vlgmr.msra.gmra.mrb[0].mxu1 %vm335_vm0, %v351_v14 }
  0x13   : > { %v336_v3 = vsel %vm335_vm0, %v334_v2, 0.0  ;;  %1438 = vmatprep.mubr.msk.f32.mxu1 %vm1553_vm1, %v1554_v13 }
  0x14   : > { %337 = vadd.xlane.f32.xlu0 %v336_v3 }
  0xa1   : > { %v338_v18 = vpop.xlane.xlu0 %337 }
  0xa2   : > { %v340_v19 = vmul.f32 0.03125, %v338_v18 }
  0xa4   : > { %v341_v20 = vadd.f32 1e-06, %v340_v19 }
  0xa6   : > { %1526 = vrsqrt.f32 %v341_v20 }
  0xb0   : > { %v1527_v21 = vpop.eup %1526 }
  0xb1   : > { %v343_v23 = vmul.f32 %v1527_v21, %v1629_v1 }
  0xb3   : > { %v350_v24 = vmul.f32 %v1361_v22, %v343_v23 }
  0xb5   : > { %1423 = vmatmul.mubr.msk.f32.vlgmr.msra.gmra.mrb[0].mxu0 %vm335_vm0, %v350_v24 }
  0xb6   : > { %1448 = vmatprep.mubr.msk.f32.mxu0 %vm1553_vm1, %v1554_v13 }
  0xe5   : > { %v1680_v25 = vpop.f32.mrb[0].mxu1 }
  0xe6   : > { %851 = vrot.lane.b32.xlu1 %v1680_v25, %s1555_s13  ;;  %v1435_v26 = vpop.f32.mrb[1].mxu1  ;;  %1437 = vmatpush3.xpose.msk.msra.mxu1 %vm508_vm2, %v1680_v25 }
  0xe7   : > { %683 = vrot.lane.b32.xlu0 %v1680_v25, %s1556_s14  ;;  %1441 = vmatprep.subr.mxu1 %v1554_v13 }
  0xea   : > { %1019 = vrot.lane.b32.xlu1 %v1680_v25, %s1557_s15 }
 0x158   : > { %v852_v30 = vpop.permute.xlu1 %851 }
 0x159   : > { %v684_v27 = vpop.permute.xlu0 %683 }
 0x15a   : > { %1447 = vmatpush3.xpose.msk.msra.mxu0 %vm508_vm2, %v684_v27 }
 0x15b   : > { %1456 = vmatprep.subr.mxu0 %v1554_v13 }
 0x15c   : > { %v1020_v31 = vpop.permute.xlu1 %1019 }
 0x188   : > { %v425_v28 = vpop.f32.mrb[0].mxu0 }
 0x189   : > { %681 = vrot.lane.b32.xlu1 %v425_v28, %s1556_s14  ;;  %v1424_v29 = vpop.f32.mrb[1].mxu0  ;;  %1439 = vmatmul.mubr.msk.f32.vlgmr.msra.gmra.mrb[2].mxu1 %vm508_vm2, %v425_v28 }
 0x18a   : > { %1443 = vmatprep.mubr.msk.f32.mxu1 %vm1553_vm1, %v1554_v13 }
 0x18d   : > { %849 = vrot.lane.b32.xlu1 %v425_v28, %s1555_s13 }
 0x191   : > { %1017 = vrot.lane.b32.xlu1 %v425_v28, %s1557_s15 }
 0x1fb   : > { %v682_v32 = vpop.permute.xlu1 %681 }
 0x1fc   : > { %1449 = vmatmul.mubr.msk.f32.vlgmr.msra.gmra.mrb[2].mxu0 %vm508_vm2, %v682_v32 }
 0x1fd   : > { %1457 = vmatpush3.xpose.msk.msra.mxu0 %vm508_vm2, %v852_v30  ;;  %1458 = vmatprep.mubr.msk.f32.mxu0 %vm1553_vm1, %v1554_v13 }
 0x1fe   : > { %1466 = vmatprep.subr.mxu0 %v1554_v13 }
 0x1ff   : > { %v850_v33 = vpop.permute.xlu1 %849 }
 0x200   : > { %1459 = vmatmul.mubr.msk.f32.vlgmr.msra.gmra.mrb[4].mxu0 %vm508_vm2, %v850_v33 }
 0x201   : > { %1467 = vmatpush3.xpose.msk.msra.mxu0 %vm508_vm2, %v1020_v31  ;;  %1468 = vmatprep.mubr.msk.f32.mxu0 %vm1553_vm1, %v1554_v13 }
 0x202   : > { %1499 = vmatprep.subr.bf16.mxu0 %v1552_v0 }
 0x203   : > { %v1018_v34 = vpop.permute.xlu1 %1017 }
 0x204   : > { %1469 = vmatmul.mubr.msk.f32.vlgmr.msra.gmra.mrb[6].mxu0 %vm508_vm2, %v1018_v34 }
 0x205   : > { %1484 = vmatprep.mubr.msk.f32.mxu0 %vm1553_vm1, %v1554_v13 }
 0x25c   : > { %v581_v36 = vpop.f32.mrb[2].mxu1 }
 0x25d   : > { %v582_v38 = vadd.f32 %v581_v36, %v507_v35  ;;  %v1440_v39 = vpop.f32.mrb[3].mxu1 }
 0x25f   : > { %v591_v40 = vadd.f32 %v1366_v37, %v582_v38  ;;  %v1201_v38 = vld [vmem:[%s1776_s5 + $0x8] sm:$0xff] }
 0x261   : > { %v592_v41 = vsel %vm508_vm2, %v591_v40, -inf }
 0x262   : > { %593 = vmax.xlane.f32.xlu1 %v592_v41 }
 0x2cf   : > { %v755_v43 = vpop.f32.mrb[2].mxu0 }
 0x2d0   : > { %v756_v44 = vadd.f32 %v1368_v42, %v755_v43  ;;  %v1450_v45 = vpop.f32.mrb[3].mxu0 }
 0x2d2   : > { %v759_v47 = vadd.f32 %v1366_v37, %v756_v44 }
 0x2d3   : > { %v923_v48 = vpop.f32.mrb[4].mxu0 }
 0x2d4   : > { %v924_v49 = vadd.f32 %v1372_v46, %v923_v48  ;;  %v1460_v50 = vpop.f32.mrb[5].mxu0  ;;  %v760_v51 = vsel %vm508_vm2, %v759_v47, -inf }
 0x2d5   : > { %761 = vmax.xlane.f32.xlu0 %v760_v51 }
 0x2d6   : > { %v927_v53 = vadd.f32 %v1366_v37, %v924_v49 }
 0x2d7   : > { %v1091_v54 = vpop.f32.mrb[6].mxu0 }
 0x2d8   : > { %v1092_v55 = vadd.f32 %v1376_v52, %v1091_v54  ;;  %v1470_v56 = vpop.f32.mrb[7].mxu0  ;;  %v928_v57 = vsel %vm508_vm2, %v927_v53, -inf }
 0x2d9   : > { %929 = vmax.xlane.f32.xlu1 %v928_v57 }
 0x2da   : > { %v1095_v58 = vadd.f32 %v1366_v37, %v1092_v55  ;;  %v1200_v37 = vld [vmem:[%s1776_s5] sm:$0xff] }
 0x2db   : > { %v1500_v39 = vpack.c.bf16 %v1201_v38, %v1200_v37 }
 0x2dc   : > { %v1096_v59 = vsel %vm508_vm2, %v1095_v58, -inf }
 0x2dd   : > { %1097 = vmax.xlane.f32.xlu0 %v1096_v59  ;;  %1501 = vmatpush3.bf16.msra.mxu0 %v1500_v39 }
 0x2de   : > { %1502 = vmatprep.subr.bf16.mxu0 %v1552_v0 }
 0x2ea   : > { %603 = vrot.lane.b32.xlu1 %v1680_v25, %s1558_s26 }
 0x2ef   : > { %v594_v60 = vpop.xlane.xlu1 %593 }
 0x2f0   : > { %v595_v61 = vsub.f32 %v591_v40, %v594_v60  ;;  %v1203_v40 = vld [vmem:[%s1776_s5 + $0x18] sm:$0xff] }
 0x2f2   : > { %v596_v62 = vmul.f32 1.442695, %v595_v61 }
 0x2f4   : > { %1528 = vpow2.f32 %v596_v62 }
 0x2fe   : > { %v1529_v63 = vpop.eup %1528 }
 0x2ff   : > { %v598_v2 = vsel %vm508_vm2, %v1529_v63, 0.0 }
 0x30e   : > { %599 = vadd.xlane.f32.xlu1 %v598_v2 }
 0x362   : > { %v762_v3 = vpop.xlane.xlu0 %761 }
 0x363   : > { %v763_v4 = vsub.f32 %v759_v47, %v762_v3 }
 0x365   : > { %v764_v5 = vmul.f32 1.442695, %v763_v4 }
 0x366   : > { %v930_v6 = vpop.xlane.xlu1 %929 }
 0x367   : > { %1530 = vpow2.f32 %v764_v5  ;;  %v931_v7 = vsub.f32 %v927_v53, %v930_v6 }
 0x369   : > { %v932_v8 = vmul.f32 1.442695, %v931_v7 }
 0x36a   : > { %v604_v9 = vpop.permute.xlu1 %603  ;;  %v1098_v10 = vpop.xlane.xlu0 %1097 }
 0x36b   : > { %1532 = vpow2.f32 %v932_v8  ;;  %v1099_v11 = vsub.f32 %v1095_v58, %v1098_v10  ;;  %1442 = vmatpush3.msra.mxu1 %v604_v9 }
 0x36c   : > { %1451 = vmatprep.subr.mxu1 %v1554_v13 }
 0x36d   : > { %v1100_v12 = vmul.f32 1.442695, %v1099_v11 }
 0x36f   : > { %1534 = vpow2.f32 %v1100_v12 }
 0x371   : > { %v1531_v14 = vpop.eup %1530 }
 0x372   : > { %v766_v15 = vsel %vm508_vm2, %v1531_v14, 0.0 }
 0x373   : > { %767 = vadd.xlane.f32.xlu0 %v766_v15 }
 0x375   : > { %v1533_v16 = vpop.eup %1532 }
 0x376   : > { %v934_v17 = vsel %vm508_vm2, %v1533_v16, 0.0 }
 0x377   : > { %935 = vadd.xlane.f32.xlu1 %v934_v17 }
 0x379   : > { %v1535_v18 = vpop.eup %1534 }
 0x37a   : > { %v1102_v19 = vsel %vm508_vm2, %v1535_v18, 0.0 }
 0x37b   : > { %1103 = vadd.xlane.f32.xlu0 %v1102_v19 }
 0x388   : > { %939 = vrot.lane.b32.xlu1 %v1680_v25, %s1559_s30 }
 0x38c   : > { %1107 = vrot.lane.b32.xlu1 %v1680_v25, %s1560_s9 }
 0x391   : > { %771 = vrot.lane.b32.xlu0 %v1680_v25, %s1561_s10 }
 0x39b   : > { %v600_v20 = vpop.xlane.xlu1 %599 }
 0x39c   : > { %1536 = vrcp.f32 %v600_v20 }
 0x3a6   : > { %v1537_v21 = vpop.eup %1536 }
 0x3a7   : > { %v602_v22 = vmul.f32 %v1537_v21, %v1529_v63 }
 0x3a9   : > { %1444 = vmatmul.mubr.msk.f32.vlgmr.msra.gmra.mrb[4].mxu1 %vm508_vm2, %v602_v22 }
 0x3aa   : > { %1453 = vmatprep.mubr.msk.f32.mxu1 %vm1553_vm1, %v1554_v13 }
 0x400   : > { %v768_v23 = vpop.xlane.xlu0 %767 }
 0x401   : > { %1538 = vrcp.f32 %v768_v23 }
 0x404   : > { %v936_v24 = vpop.xlane.xlu1 %935 }
 0x405   : > { %1540 = vrcp.f32 %v936_v24 }
 0x408   : > { %v1104_v26 = vpop.xlane.xlu0 %1103  ;;  %v940_v29 = vpop.permute.xlu1 %939 }
 0x409   : > { %1542 = vrcp.f32 %v1104_v26 }
 0x40b   : > { %v1539_v27 = vpop.eup %1538 }
 0x40c   : > { %v770_v28 = vmul.f32 %v1539_v27, %v1531_v14  ;;  %v772_v30 = vpop.permute.xlu0 %771  ;;  %v1108_v32 = vpop.permute.xlu1 %1107 }
 0x40d   : > { %1452 = vmatpush3.msra.mxu1 %v772_v30 }
 0x40e   : > { %1454 = vmatmul.mubr.msk.f32.vlgmr.msra.gmra.mrb[6].mxu1 %vm508_vm2, %v770_v28  ;;  %1461 = vmatprep.subr.mxu1 %v1554_v13 }
 0x40f   : > { %v1541_v25 = vpop.eup %1540  ;;  %1462 = vmatpush3.msra.mxu1 %v940_v29  ;;  %1463 = vmatprep.mubr.msk.f32.mxu1 %vm1553_vm1, %v1554_v13 }
 0x410   : > { %v938_v31 = vmul.f32 %v1541_v25, %v1533_v16  ;;  %1471 = vmatprep.subr.mxu1 %v1554_v13 }
 0x412   : > { %1464 = vmatmul.mubr.msk.f32.vlgmr.msra.gmra.mrb[8].mxu1 %vm508_vm2, %v938_v31 }
 0x413   : > { %v1543_v33 = vpop.eup %1542  ;;  %1472 = vmatpush3.msra.mxu1 %v1108_v32  ;;  %1473 = vmatprep.mubr.msk.f32.mxu1 %vm1553_vm1, %v1554_v13  ;;  %v1202_v13 = vld [vmem:[%s1776_s5 + $0x10] sm:$0xff] }
 0x414   : > { %v1106_v34 = vmul.f32 %v1543_v33, %v1535_v18  ;;  %v1503_v41 = vpack.c.bf16 %v1203_v40, %v1202_v13 }
 0x416   : > { %1474 = vmatmul.mubr.msk.f32.vlgmr.msra.gmra.mrb[10].mxu1 %vm508_vm2, %v1106_v34  ;;  %1504 = vmatpush3.bf16.msra.mxu0 %v1503_v41 }
 0x47c   : > { %v675_v35 = vpop.f32.mrb[4].mxu1 }
 0x47d   : > { %v1445_v36 = vpop.f32.mrb[5].mxu1 }
 0x4e1   : > { %v843_v42 = vpop.f32.mrb[6].mxu1 }
 0x4e2   : > { %1184 = vrot.lane.b32.xlu0 %v843_v42, %s1562_s19  ;;  %v1455_v43 = vpop.f32.mrb[7].mxu1 }
 0x4e5   : > { %v1011_v44 = vpop.f32.mrb[8].mxu1 }
 0x4e6   : > { %1188 = vrot.lane.b32.xlu1 %v1011_v44, %s1563_s20  ;;  %v1465_v45 = vpop.f32.mrb[9].mxu1 }
 0x4e9   : > { %v1179_v0 = vpop.f32.mrb[10].mxu1 }
 0x4ea   : > { %1192 = vrot.lane.b32.xlu0 %v1179_v0, %s1564_s21  ;;  %v1475_v46 = vpop.f32.mrb[11].mxu1 }
 0x554   : > { %v1185_v47 = vpop.permute.xlu0 %1184 }
 0x555   : > { %v1195_v49 = vsel %vm508_vm2, %v675_v35, %v1185_v47 }
 0x558   : > { %v1189_v48 = vpop.permute.xlu1 %1188 }
 0x559   : > { %v1197_v50 = vsel %vm1196_vm3, %v1195_v49, %v1189_v48 }
 0x55c   : > { %v1193_v51 = vpop.permute.xlu0 %1192 }
 0x55d   : > { %v1199_v52 = vsel %vm1198_vm4, %v1197_v50, %v1193_v51 }
 0x55e   : > { %1485 = vmatmul.mubr.msk.f32.vlgmr.msra.gmra.mrb[8].mxu0 %vm335_vm0, %v1199_v52 }
 0x631   : > { %v1273_v53 = vpop.f32.mrb[8].mxu0 }
 0x632   : > { %v1277_v54 = vadd.f32 %v1273_v53, %v1629_v1  ;;  %v1486_v55 = vpop.f32.mrb[9].mxu0 }
 0x634   : > { %1278 = vst.msk [vmem:[%s331_s23] sm:$0xff] %vm335_vm0, %v1277_v54 }
 0x635 PF: > { %s18_s27 = sadd.s32 1, %s1550_s27  }
 0x636   : > { %p15_p4 = scmp.ge.s32.totalorder %s18_s27, 4  }
 0x638   :  { %17 = sbr.rel (!%p15_p4) target bundleno = 1 (0x1), region = 91 }

</bundles_post_ra>
